<compile_context>
chip_gen: v7x
topology: tpu7x:2x2x1
jax: 0.10.0
libtpu: 0.0.40
codegen_flags: <defaults>
</compile_context>

<pallas_src>
import functools

import jax
import jax.numpy as jnp
import numpy as np
from jax.experimental import pallas as pl
from jax.experimental.pallas import tpu as pltpu

EPS = 1e-5


# ---------------------------------------------------------------------------
# Geometry helpers
# ---------------------------------------------------------------------------
def _pick_row_stride(H, W, P):
    """Padded-canvas row stride: >= W + 3P for correctness of the flat-shift conv; rounded up so
    the stored conv2 plane (H * Ws lanes) is a multiple of 128 (unmasked full-lane stores)."""
    base = W + 3 * P
    for extra in range(0, 129):
        ws = base + extra
        if (H * ws) % 128 == 0:
            return ws
    return base


def _unpool_padded_flat(x, indices, output_size, P, Ws, Hp):
    """MaxUnpool2d(kernel_size=2) as a compare/select (no scatter), emitted directly in the
    kernel's channel-major flattened layout: (N, C, Hp*Ws) with a 2P top/left zero ring.
    TODO(synk): assumes each index points inside its own 2x2 pooling window (always true for
                indices produced by MaxPool2d(kernel_size=2)); PyTorch's arbitrary-index scatter
                is not reproduced for out-of-window indices."""
    N, C, Hpool, Wpool = x.shape
    Ho, Wo = output_size
    x_up = jnp.repeat(jnp.repeat(x.astype(jnp.float32), 2, axis=2), 2, axis=3)
    idx_up = jnp.repeat(jnp.repeat(indices, 2, axis=2), 2, axis=3)
    hh = jnp.arange(2 * Hpool, dtype=indices.dtype)
    ww = jnp.arange(2 * Wpool, dtype=indices.dtype)
    tgt = hh[:, None] * Wo + ww[None, :]
    y = jnp.where(idx_up == tgt[None, None], x_up, 0.0)          # (N, C, 2Hpool, 2Wpool), NCHW
    y = jnp.pad(y, ((0, 0), (0, 0),
                    (2 * P, Hp - 2 * P - 2 * Hpool),
                    (2 * P, Ws - 2 * P - 2 * Wpool)))
    return y.reshape(N, C, Hp * Ws)                               # channel-major, flat spatial


# ---------------------------------------------------------------------------
# Fully fused Pallas kernel: conv1 -> BN1(batch stats) -> ReLU -> conv2 -> BN2 (-> ReLU)
# ---------------------------------------------------------------------------
def _make_fused_kernel(N, K, Cin, Cout, Ws, L1, L2s, inv_count, remove_final_relu):
    def kernel(yp_ref, w1_ref, w2_ref, g1_ref, b1_ref, g2_ref, b2_ref,
               m1_ref, m2_ref, o_ref):
        f32 = jnp.float32
        mask1 = m1_ref[...]                      # (1, L1)  valid conv1-output positions
        mask2 = m2_ref[...]                      # (1, L2s) valid conv2-output positions

        # ---- conv1: per image, K*K tap dots on lane-shifted slices of the flat canvas ------
        z1_list = []
        for n in range(N):
            y = yp_ref[n].astype(f32)            # (Cin, Lc), channel-major
            z1 = jnp.zeros((Cin, L1), f32)
            for kh in range(K):
                for kw in range(K):
                    d = kh * Ws + kw
                    z1 = z1 + jnp.dot(w1_ref[kh * K + kw].astype(f32),   # (Cin, Cin) = (co, ci)
                                      y[:, d:d + L1],
                                      preferred_element_type=f32)
            z1_list.append(z1 * mask1)           # zero ring / row-wrap garbage positions

        # ---- BN1 batch stats (training mode), single pass over valid pixels ----------------
        s1 = jnp.zeros((Cin, 1), f32)
        q1 = jnp.zeros((Cin, 1), f32)
        for z1 in z1_list:
            s1 = s1 + jnp.sum(z1, axis=1, keepdims=True)
            q1 = q1 + jnp.sum(z1 * z1, axis=1, keepdims=True)
        mean1 = s1 * inv_count
        var1 = q1 * inv_count - mean1 * mean1
        scale1 = g1_ref[...].astype(f32) * jax.lax.rsqrt(var1 + EPS)     # (Cin, 1)
        shift1 = b1_ref[...].astype(f32) - mean1 * scale1

        # ---- BN1 affine + ReLU, re-masked so the ring is an exact zero pad for conv2 -------
        a1_list = [jnp.maximum(z1 * scale1 + shift1, 0.0) * mask1 for z1 in z1_list]

        # ---- conv2: result directly in (Cout, spatial) orientation (no output transpose) ---
        z2_list = []
        for a1 in a1_list:
            z2 = jnp.zeros((Cout, L2s), f32)
            for kh in range(K):
                for kw in range(K):
                    d = kh * Ws + kw
                    z2 = z2 + jnp.dot(w2_ref[kh * K + kw].astype(f32),   # (Cout, Cin)
                                      a1[:, d:d + L2s],
                                      preferred_element_type=f32)
            z2_list.append(z2)

        # ---- BN2 batch stats (masked, single pass) ------------------------------------------
        s2 = jnp.zeros((Cout, 1), f32)
        q2 = jnp.zeros((Cout, 1), f32)
        for z2 in z2_list:
            z2m = z2 * mask2
            s2 = s2 + jnp.sum(z2m, axis=1, keepdims=True)
            q2 = q2 + jnp.sum(z2m * z2m, axis=1, keepdims=True)
        mean2 = s2 * inv_count
        var2 = q2 * inv_count - mean2 * mean2
        scale2 = g2_ref[...].astype(f32) * jax.lax.rsqrt(var2 + EPS)     # (Cout, 1)
        shift2 = b2_ref[...].astype(f32) - mean2 * scale2

        # ---- affine (+ final ReLU) and lane-dense, NCHW-ordered stores ----------------------
        for n in range(N):
            out = z2_list[n] * scale2 + shift2
            if not remove_final_relu:
                out = jnp.maximum(out, 0.0)
            o_ref[n] = out.astype(o_ref.dtype)   # (Cout, L2s), L2s = multiple of 128 lanes

    return kernel


# ---------------------------------------------------------------------------
# UpConv2 forward
# ---------------------------------------------------------------------------
def upconv2_forward(x, indices, output_size, params, remove_final_relu=False):
    N = x.shape[0]
    K = params["w1"].shape[0]
    Cin = params["w1"].shape[2]
    Cout = params["w2"].shape[3]
    P = K // 2
    H, W = output_size

    # Flattened padded-canvas geometry (channel-major, spatial on the lane axis).
    Ws = _pick_row_stride(H, W, P)          # canvas row stride (16x16, K=3 -> 24)
    L2s = H * Ws                            # conv2 / store flat length (full canvas rows)
    L1 = L2s + 2 * P * Ws + 2 * P           # conv1 flat length (covers conv2's shifted reads)
    Lpad = L1 + 2 * P * Ws + 2 * P          # canvas length conv1's shifted reads require
    Hp = -(-Lpad // Ws)                     # canvas rows
    # allocated canvas flat length = Hp * Ws

    # Unpool (compare/select) + zero ring, already in the kernel layout (no full-res transpose).
    yp = _unpool_padded_flat(x, indices, (H, W), P, Ws, Hp)      # (N, Cin, Hp*Ws) f32

    # Per-tap weights, pre-transposed to (co, ci) so conv outputs land channel-major.
    w1t = jnp.transpose(params["w1"], (0, 1, 3, 2)).reshape(K * K, Cin, Cin).astype(jnp.float32)
    w2t = jnp.transpose(params["w2"], (0, 1, 3, 2)).reshape(K * K, Cout, Cin).astype(jnp.float32)
    g1 = params["gamma1"].reshape(Cin, 1).astype(jnp.float32)
    b1 = params["beta1"].reshape(Cin, 1).astype(jnp.float32)
    g2 = params["gamma2"].reshape(Cout, 1).astype(jnp.float32)
    b2 = params["beta2"].reshape(Cout, 1).astype(jnp.float32)

    # 0/1 validity masks over the flat grid (ring re-zeroing + BN statistics).
    p1 = np.arange(L1)
    mask1 = (((p1 // Ws) >= P) & ((p1 // Ws) < P + H) &
             ((p1 % Ws) >= P) & ((p1 % Ws) < P + W)).astype(np.float32)[None, :]
    p2 = np.arange(L2s)
    mask2 = ((p2 % Ws) < W).astype(np.float32)[None, :]
    mask1 = jnp.asarray(mask1)
    mask2 = jnp.asarray(mask2)

    inv_count = 1.0 / float(N * H * W)
    kernel = _make_fused_kernel(N, K, Cin, Cout, Ws, L1, L2s, inv_count, remove_final_relu)

    flops = 2 * N * K * K * (Cin * Cin * L1 + Cin * Cout * L2s)
    bytes_accessed = 4 * int(yp.size + w1t.size + w2t.size + g1.size + b1.size + g2.size
                             + b2.size + mask1.size + mask2.size + N * Cout * L2s)

    out_flat = pl.pallas_call(
        kernel,
        out_shape=jax.ShapeDtypeStruct((N, Cout, L2s), jnp.float32),
        grid=(1,),
        in_specs=[
            pl.BlockSpec(yp.shape, lambda i: (0, 0, 0)),
            pl.BlockSpec(w1t.shape, lambda i: (0, 0, 0)),
            pl.BlockSpec(w2t.shape, lambda i: (0, 0, 0)),
            pl.BlockSpec(g1.shape, lambda i: (0, 0)),
            pl.BlockSpec(b1.shape, lambda i: (0, 0)),
            pl.BlockSpec(g2.shape, lambda i: (0, 0)),
            pl.BlockSpec(b2.shape, lambda i: (0, 0)),
            pl.BlockSpec(mask1.shape, lambda i: (0, 0)),
            pl.BlockSpec(mask2.shape, lambda i: (0, 0)),
        ],
        out_specs=pl.BlockSpec((N, Cout, L2s), lambda i: (0, 0, 0)),
        compiler_params=pltpu.CompilerParams(dimension_semantics=("arbitrary",)),
        cost_estimate=pl.CostEstimate(flops=flops, transcendentals=Cin + Cout,
                                      bytes_accessed=bytes_accessed),
    )(yp, w1t, w2t, g1, b1, g2, b2, mask1, mask2)

    # Canvas rows -> NCHW: free reshape + one tiny strided slice dropping the right pad columns.
    return out_flat.reshape(N, Cout, H, Ws)[:, :, :, :W]


# ---------------------------------------------------------------------------
# Plain-JAX reference (PyTorch semantics, scatter-based unpool) for correctness check
# ---------------------------------------------------------------------------
def max_unpool2d_ref(x, indices, output_size):
    N, C, Hp, Wp = x.shape
    Ho, Wo = output_size
    flat = jnp.zeros((N, C, Ho * Wo), x.dtype)
    n_idx = jnp.arange(N)[:, None, None]
    c_idx = jnp.arange(C)[None, :, None]
    flat = flat.at[n_idx, c_idx, indices.reshape(N, C, -1)].set(x.reshape(N, C, -1))
    return flat.reshape(N, C, Ho, Wo)


def upconv2_reference(x, indices, output_size, params, remove_final_relu=False):
    y = max_unpool2d_ref(x, indices, output_size).astype(jnp.float32)   # NCHW

    def conv(inp, w_kkio):
        w_oihw = jnp.transpose(w_kkio, (3, 2, 0, 1))
        return jax.lax.conv_general_dilated(inp, w_oihw, (1, 1), "SAME")

    def bn(inp, gamma, beta):
        mean = inp.mean(axis=(0, 2, 3), keepdims=True)
        var = ((inp - mean) ** 2).mean(axis=(0, 2, 3), keepdims=True)
        return (inp - mean) / jnp.sqrt(var + EPS) * gamma[None, :, None, None] \
            + beta[None, :, None, None]

    z = conv(y, params["w1"])
    z = jnp.maximum(bn(z, params["gamma1"], params["beta1"]), 0.0)
    z = conv(z, params["w2"])
    z = bn(z, params["gamma2"], params["beta2"])
    if not remove_final_relu:
        z = jnp.maximum(z, 0.0)
    return z


if __name__ == "__main__":
    # Small shapes: chin=4, chout=8, kernel_size=3, pooled input 8x8 -> unpooled 16x16.
    N, CHIN, CHOUT, K = 2, 4, 8, 3
    HO, WO = 16, 16
    HP, WP = HO // 2, WO // 2

    key = jax.random.PRNGKey(0)
    k_full, k_w1, k_w2, k_g1, k_b1, k_g2, k_b2 = jax.random.split(key, 7)

    # Build pooled values + valid MaxPool2d(2) indices from a dense 16x16 tensor.
    full = jax.random.normal(k_full, (N, CHIN, HO, WO), jnp.float32)
    windows = full.reshape(N, CHIN, HP, 2, WP, 2).transpose(0, 1, 2, 4, 3, 5) \
                  .reshape(N, CHIN, HP, WP, 4)
    x = windows.max(-1)                                             # pooled values (N,C,8,8)
    arg = windows.argmax(-1)
    di, dj = arg // 2, arg % 2
    rows = 2 * jnp.arange(HP)[None, None, :, None] + di
    cols = 2 * jnp.arange(WP)[None, None, None, :] + dj
    indices = (rows * WO + cols).astype(jnp.int32)                  # flat indices into 16*16 plane

    params = {
        "w1": 0.1 * jax.random.normal(k_w1, (K, K, CHIN, CHIN), jnp.float32),
        "w2": 0.1 * jax.random.normal(k_w2, (K, K, CHIN, CHOUT), jnp.float32),
        "gamma1": 1.0 + 0.1 * jax.random.normal(k_g1, (CHIN,), jnp.float32),
        "beta1": 0.1 * jax.random.normal(k_b1, (CHIN,), jnp.float32),
        "gamma2": 1.0 + 0.1 * jax.random.normal(k_g2, (CHOUT,), jnp.float32),
        "beta2": 0.1 * jax.random.normal(k_b2, (CHOUT,), jnp.float32),
    }

    fwd = jax.jit(functools.partial(upconv2_forward, output_size=(HO, WO),
                                    params=params, remove_final_relu=False))
    out = fwd(x, indices)
    out = jax.block_until_ready(out)

    ref = upconv2_reference(x, indices, (HO, WO), params, remove_final_relu=False)
    assert out.shape == (N, CHOUT, HO, WO)
    np.testing.assert_allclose(np.asarray(out), np.asarray(ref), rtol=1e-4, atol=1e-4)

    print("KERNEL_OK")
</pallas_src>

<mosaic_0001>
module attributes {stable_mosaic.version = 11 : i64} {
  func.func @kernel(%arg0: i32, %arg1: memref<2x4x504xf32, #tpu.memory_space<vmem>>, %arg2: memref<9x4x4xf32, #tpu.memory_space<vmem>>, %arg3: memref<9x8x4xf32, #tpu.memory_space<vmem>>, %arg4: memref<4x1xf32, #tpu.memory_space<vmem>>, %arg5: memref<4x1xf32, #tpu.memory_space<vmem>>, %arg6: memref<8x1xf32, #tpu.memory_space<vmem>>, %arg7: memref<8x1xf32, #tpu.memory_space<vmem>>, %arg8: memref<1x434xf32, #tpu.memory_space<vmem>>, %arg9: memref<1x384xf32, #tpu.memory_space<vmem>>, %arg10: memref<2x8x384xf32, #tpu.memory_space<vmem>>) attributes {dimension_semantics = [#tpu.dimension_semantics<arbitrary>], iteration_bounds = array<i64: 1>, scalar_prefetch = 0 : i64, scratch_operands = 0 : i64, tpu.core_type = #tpu.core_type<tc>, window_params = [{pipeline_mode = #tpu.pipeline_mode<synchronous>, transform_indices = @transform_0, window_bounds = array<i64: 2, 4, 504>}, {pipeline_mode = #tpu.pipeline_mode<synchronous>, transform_indices = @transform_1, window_bounds = array<i64: 9, 4, 4>}, {pipeline_mode = #tpu.pipeline_mode<synchronous>, transform_indices = @transform_2, window_bounds = array<i64: 9, 8, 4>}, {pipeline_mode = #tpu.pipeline_mode<synchronous>, transform_indices = @transform_3, window_bounds = array<i64: 4, 1>}, {pipeline_mode = #tpu.pipeline_mode<synchronous>, transform_indices = @transform_4, window_bounds = array<i64: 4, 1>}, {pipeline_mode = #tpu.pipeline_mode<synchronous>, transform_indices = @transform_5, window_bounds = array<i64: 8, 1>}, {pipeline_mode = #tpu.pipeline_mode<synchronous>, transform_indices = @transform_6, window_bounds = array<i64: 8, 1>}, {pipeline_mode = #tpu.pipeline_mode<synchronous>, transform_indices = @transform_7, window_bounds = array<i64: 1, 434>}, {pipeline_mode = #tpu.pipeline_mode<synchronous>, transform_indices = @transform_8, window_bounds = array<i64: 1, 384>}, {pipeline_mode = #tpu.pipeline_mode<synchronous>, transform_indices = @transform_9, window_bounds = array<i64: 2, 8, 384>}]} {
    %c0 = arith.constant 0 : index
    %c0_0 = arith.constant 0 : index
    %0 = vector.load %arg8[%c0, %c0_0] : memref<1x434xf32, #tpu.memory_space<vmem>>, vector<1x434xf32>
    %c0_1 = arith.constant 0 : index
    %c0_2 = arith.constant 0 : index
    %1 = vector.load %arg9[%c0_1, %c0_2] : memref<1x384xf32, #tpu.memory_space<vmem>>, vector<1x384xf32>
    %c0_3 = arith.constant 0 : index
    %c0_4 = arith.constant 0 : index
    %c0_5 = arith.constant 0 : index
    %2 = vector.load %arg1[%c0_3, %c0_4, %c0_5] : memref<2x4x504xf32, #tpu.memory_space<vmem>>, vector<1x4x504xf32>
    %3 = vector.shape_cast %2 : vector<1x4x504xf32> to vector<4x504xf32>
    %cst = arith.constant 0.000000e+00 : f32
    %4 = vector.broadcast %cst : f32 to vector<4x434xf32>
    %c0_6 = arith.constant 0 : index
    %c0_7 = arith.constant 0 : index
    %c0_8 = arith.constant 0 : index
    %5 = vector.load %arg2[%c0_6, %c0_7, %c0_8] : memref<9x4x4xf32, #tpu.memory_space<vmem>>, vector<1x4x4xf32>
    %6 = vector.shape_cast %5 : vector<1x4x4xf32> to vector<4x4xf32>
    %7 = vector.extract_strided_slice %3 {offsets = [0, 0], sizes = [4, 434], strides = [1, 1]} : vector<4x504xf32> to vector<4x434xf32>
    %cst_9 = arith.constant dense<0.000000e+00> : vector<4x434xf32>
    %8 = tpu.matmul %6, %7, %cst_9 {dimension_numbers = #tpu.dot_dimension_numbers<[1], [0], [0], [1], [0, 0, 1, 1], [], []>} : vector<4x4xf32>, vector<4x434xf32>, vector<4x434xf32> -> vector<4x434xf32>
    %9 = arith.addf %4, %8 : vector<4x434xf32>
    %c1 = arith.constant 1 : index
    %c0_10 = arith.constant 0 : index
    %c0_11 = arith.constant 0 : index
    %10 = vector.load %arg2[%c1, %c0_10, %c0_11] : memref<9x4x4xf32, #tpu.memory_space<vmem>>, vector<1x4x4xf32>
    %11 = vector.shape_cast %10 : vector<1x4x4xf32> to vector<4x4xf32>
    %12 = vector.extract_strided_slice %3 {offsets = [0, 1], sizes = [4, 434], strides = [1, 1]} : vector<4x504xf32> to vector<4x434xf32>
    %cst_12 = arith.constant dense<0.000000e+00> : vector<4x434xf32>
    %13 = tpu.matmul %11, %12, %cst_12 {dimension_numbers = #tpu.dot_dimension_numbers<[1], [0], [0], [1], [0, 0, 1, 1], [], []>} : vector<4x4xf32>, vector<4x434xf32>, vector<4x434xf32> -> vector<4x434xf32>
    %14 = arith.addf %9, %13 : vector<4x434xf32>
    %c2 = arith.constant 2 : index
    %c0_13 = arith.constant 0 : index
    %c0_14 = arith.constant 0 : index
    %15 = vector.load %arg2[%c2, %c0_13, %c0_14] : memref<9x4x4xf32, #tpu.memory_space<vmem>>, vector<1x4x4xf32>
    %16 = vector.shape_cast %15 : vector<1x4x4xf32> to vector<4x4xf32>
    %17 = vector.extract_strided_slice %3 {offsets = [0, 2], sizes = [4, 434], strides = [1, 1]} : vector<4x504xf32> to vector<4x434xf32>
    %cst_15 = arith.constant dense<0.000000e+00> : vector<4x434xf32>
    %18 = tpu.matmul %16, %17, %cst_15 {dimension_numbers = #tpu.dot_dimension_numbers<[1], [0], [0], [1], [0, 0, 1, 1], [], []>} : vector<4x4xf32>, vector<4x434xf32>, vector<4x434xf32> -> vector<4x434xf32>
    %19 = arith.addf %14, %18 : vector<4x434xf32>
    %c3 = arith.constant 3 : index
    %c0_16 = arith.constant 0 : index
    %c0_17 = arith.constant 0 : index
    %20 = vector.load %arg2[%c3, %c0_16, %c0_17] : memref<9x4x4xf32, #tpu.memory_space<vmem>>, vector<1x4x4xf32>
    %21 = vector.shape_cast %20 : vector<1x4x4xf32> to vector<4x4xf32>
    %22 = vector.extract_strided_slice %3 {offsets = [0, 24], sizes = [4, 434], strides = [1, 1]} : vector<4x504xf32> to vector<4x434xf32>
    %cst_18 = arith.constant dense<0.000000e+00> : vector<4x434xf32>
    %23 = tpu.matmul %21, %22, %cst_18 {dimension_numbers = #tpu.dot_dimension_numbers<[1], [0], [0], [1], [0, 0, 1, 1], [], []>} : vector<4x4xf32>, vector<4x434xf32>, vector<4x434xf32> -> vector<4x434xf32>
    %24 = arith.addf %19, %23 : vector<4x434xf32>
    %c4 = arith.constant 4 : index
    %c0_19 = arith.constant 0 : index
    %c0_20 = arith.constant 0 : index
    %25 = vector.load %arg2[%c4, %c0_19, %c0_20] : memref<9x4x4xf32, #tpu.memory_space<vmem>>, vector<1x4x4xf32>
    %26 = vector.shape_cast %25 : vector<1x4x4xf32> to vector<4x4xf32>
    %27 = vector.extract_strided_slice %3 {offsets = [0, 25], sizes = [4, 434], strides = [1, 1]} : vector<4x504xf32> to vector<4x434xf32>
    %cst_21 = arith.constant dense<0.000000e+00> : vector<4x434xf32>
    %28 = tpu.matmul %26, %27, %cst_21 {dimension_numbers = #tpu.dot_dimension_numbers<[1], [0], [0], [1], [0, 0, 1, 1], [], []>} : vector<4x4xf32>, vector<4x434xf32>, vector<4x434xf32> -> vector<4x434xf32>
    %29 = arith.addf %24, %28 : vector<4x434xf32>
    %c5 = arith.constant 5 : index
    %c0_22 = arith.constant 0 : index
    %c0_23 = arith.constant 0 : index
    %30 = vector.load %arg2[%c5, %c0_22, %c0_23] : memref<9x4x4xf32, #tpu.memory_space<vmem>>, vector<1x4x4xf32>
    %31 = vector.shape_cast %30 : vector<1x4x4xf32> to vector<4x4xf32>
    %32 = vector.extract_strided_slice %3 {offsets = [0, 26], sizes = [4, 434], strides = [1, 1]} : vector<4x504xf32> to vector<4x434xf32>
    %cst_24 = arith.constant dense<0.000000e+00> : vector<4x434xf32>
    %33 = tpu.matmul %31, %32, %cst_24 {dimension_numbers = #tpu.dot_dimension_numbers<[1], [0], [0], [1], [0, 0, 1, 1], [], []>} : vector<4x4xf32>, vector<4x434xf32>, vector<4x434xf32> -> vector<4x434xf32>
    %34 = arith.addf %29, %33 : vector<4x434xf32>
    %c6 = arith.constant 6 : index
    %c0_25 = arith.constant 0 : index
    %c0_26 = arith.constant 0 : index
    %35 = vector.load %arg2[%c6, %c0_25, %c0_26] : memref<9x4x4xf32, #tpu.memory_space<vmem>>, vector<1x4x4xf32>
    %36 = vector.shape_cast %35 : vector<1x4x4xf32> to vector<4x4xf32>
    %37 = vector.extract_strided_slice %3 {offsets = [0, 48], sizes = [4, 434], strides = [1, 1]} : vector<4x504xf32> to vector<4x434xf32>
    %cst_27 = arith.constant dense<0.000000e+00> : vector<4x434xf32>
    %38 = tpu.matmul %36, %37, %cst_27 {dimension_numbers = #tpu.dot_dimension_numbers<[1], [0], [0], [1], [0, 0, 1, 1], [], []>} : vector<4x4xf32>, vector<4x434xf32>, vector<4x434xf32> -> vector<4x434xf32>
    %39 = arith.addf %34, %38 : vector<4x434xf32>
    %c7 = arith.constant 7 : index
    %c0_28 = arith.constant 0 : index
    %c0_29 = arith.constant 0 : index
    %40 = vector.load %arg2[%c7, %c0_28, %c0_29] : memref<9x4x4xf32, #tpu.memory_space<vmem>>, vector<1x4x4xf32>
    %41 = vector.shape_cast %40 : vector<1x4x4xf32> to vector<4x4xf32>
    %42 = vector.extract_strided_slice %3 {offsets = [0, 49], sizes = [4, 434], strides = [1, 1]} : vector<4x504xf32> to vector<4x434xf32>
    %cst_30 = arith.constant dense<0.000000e+00> : vector<4x434xf32>
    %43 = tpu.matmul %41, %42, %cst_30 {dimension_numbers = #tpu.dot_dimension_numbers<[1], [0], [0], [1], [0, 0, 1, 1], [], []>} : vector<4x4xf32>, vector<4x434xf32>, vector<4x434xf32> -> vector<4x434xf32>
    %44 = arith.addf %39, %43 : vector<4x434xf32>
    %c8 = arith.constant 8 : index
    %c0_31 = arith.constant 0 : index
    %c0_32 = arith.constant 0 : index
    %45 = vector.load %arg2[%c8, %c0_31, %c0_32] : memref<9x4x4xf32, #tpu.memory_space<vmem>>, vector<1x4x4xf32>
    %46 = vector.shape_cast %45 : vector<1x4x4xf32> to vector<4x4xf32>
    %47 = vector.extract_strided_slice %3 {offsets = [0, 50], sizes = [4, 434], strides = [1, 1]} : vector<4x504xf32> to vector<4x434xf32>
    %cst_33 = arith.constant dense<0.000000e+00> : vector<4x434xf32>
    %48 = tpu.matmul %46, %47, %cst_33 {dimension_numbers = #tpu.dot_dimension_numbers<[1], [0], [0], [1], [0, 0, 1, 1], [], []>} : vector<4x4xf32>, vector<4x434xf32>, vector<4x434xf32> -> vector<4x434xf32>
    %49 = arith.addf %44, %48 : vector<4x434xf32>
    %50 = vector.broadcast %0 : vector<1x434xf32> to vector<4x434xf32>
    %51 = arith.mulf %49, %50 : vector<4x434xf32>
    %c1_34 = arith.constant 1 : index
    %c0_35 = arith.constant 0 : index
    %c0_36 = arith.constant 0 : index
    %52 = vector.load %arg1[%c1_34, %c0_35, %c0_36] : memref<2x4x504xf32, #tpu.memory_space<vmem>>, vector<1x4x504xf32>
    %53 = vector.shape_cast %52 : vector<1x4x504xf32> to vector<4x504xf32>
    %cst_37 = arith.constant 0.000000e+00 : f32
    %54 = vector.broadcast %cst_37 : f32 to vector<4x434xf32>
    %c0_38 = arith.constant 0 : index
    %c0_39 = arith.constant 0 : index
    %c0_40 = arith.constant 0 : index
    %55 = vector.load %arg2[%c0_38, %c0_39, %c0_40] : memref<9x4x4xf32, #tpu.memory_space<vmem>>, vector<1x4x4xf32>
    %56 = vector.shape_cast %55 : vector<1x4x4xf32> to vector<4x4xf32>
    %57 = vector.extract_strided_slice %53 {offsets = [0, 0], sizes = [4, 434], strides = [1, 1]} : vector<4x504xf32> to vector<4x434xf32>
    %cst_41 = arith.constant dense<0.000000e+00> : vector<4x434xf32>
    %58 = tpu.matmul %56, %57, %cst_41 {dimension_numbers = #tpu.dot_dimension_numbers<[1], [0], [0], [1], [0, 0, 1, 1], [], []>} : vector<4x4xf32>, vector<4x434xf32>, vector<4x434xf32> -> vector<4x434xf32>
    %59 = arith.addf %54, %58 : vector<4x434xf32>
    %c1_42 = arith.constant 1 : index
    %c0_43 = arith.constant 0 : index
    %c0_44 = arith.constant 0 : index
    %60 = vector.load %arg2[%c1_42, %c0_43, %c0_44] : memref<9x4x4xf32, #tpu.memory_space<vmem>>, vector<1x4x4xf32>
    %61 = vector.shape_cast %60 : vector<1x4x4xf32> to vector<4x4xf32>
    %62 = vector.extract_strided_slice %53 {offsets = [0, 1], sizes = [4, 434], strides = [1, 1]} : vector<4x504xf32> to vector<4x434xf32>
    %cst_45 = arith.constant dense<0.000000e+00> : vector<4x434xf32>
    %63 = tpu.matmul %61, %62, %cst_45 {dimension_numbers = #tpu.dot_dimension_numbers<[1], [0], [0], [1], [0, 0, 1, 1], [], []>} : vector<4x4xf32>, vector<4x434xf32>, vector<4x434xf32> -> vector<4x434xf32>
    %64 = arith.addf %59, %63 : vector<4x434xf32>
    %c2_46 = arith.constant 2 : index
    %c0_47 = arith.constant 0 : index
    %c0_48 = arith.constant 0 : index
    %65 = vector.load %arg2[%c2_46, %c0_47, %c0_48] : memref<9x4x4xf32, #tpu.memory_space<vmem>>, vector<1x4x4xf32>
    %66 = vector.shape_cast %65 : vector<1x4x4xf32> to vector<4x4xf32>
    %67 = vector.extract_strided_slice %53 {offsets = [0, 2], sizes = [4, 434], strides = [1, 1]} : vector<4x504xf32> to vector<4x434xf32>
    %cst_49 = arith.constant dense<0.000000e+00> : vector<4x434xf32>
    %68 = tpu.matmul %66, %67, %cst_49 {dimension_numbers = #tpu.dot_dimension_numbers<[1], [0], [0], [1], [0, 0, 1, 1], [], []>} : vector<4x4xf32>, vector<4x434xf32>, vector<4x434xf32> -> vector<4x434xf32>
    %69 = arith.addf %64, %68 : vector<4x434xf32>
    %c3_50 = arith.constant 3 : index
    %c0_51 = arith.constant 0 : index
    %c0_52 = arith.constant 0 : index
    %70 = vector.load %arg2[%c3_50, %c0_51, %c0_52] : memref<9x4x4xf32, #tpu.memory_space<vmem>>, vector<1x4x4xf32>
    %71 = vector.shape_cast %70 : vector<1x4x4xf32> to vector<4x4xf32>
    %72 = vector.extract_strided_slice %53 {offsets = [0, 24], sizes = [4, 434], strides = [1, 1]} : vector<4x504xf32> to vector<4x434xf32>
    %cst_53 = arith.constant dense<0.000000e+00> : vector<4x434xf32>
    %73 = tpu.matmul %71, %72, %cst_53 {dimension_numbers = #tpu.dot_dimension_numbers<[1], [0], [0], [1], [0, 0, 1, 1], [], []>} : vector<4x4xf32>, vector<4x434xf32>, vector<4x434xf32> -> vector<4x434xf32>
    %74 = arith.addf %69, %73 : vector<4x434xf32>
    %c4_54 = arith.constant 4 : index
    %c0_55 = arith.constant 0 : index
    %c0_56 = arith.constant 0 : index
    %75 = vector.load %arg2[%c4_54, %c0_55, %c0_56] : memref<9x4x4xf32, #tpu.memory_space<vmem>>, vector<1x4x4xf32>
    %76 = vector.shape_cast %75 : vector<1x4x4xf32> to vector<4x4xf32>
    %77 = vector.extract_strided_slice %53 {offsets = [0, 25], sizes = [4, 434], strides = [1, 1]} : vector<4x504xf32> to vector<4x434xf32>
    %cst_57 = arith.constant dense<0.000000e+00> : vector<4x434xf32>
    %78 = tpu.matmul %76, %77, %cst_57 {dimension_numbers = #tpu.dot_dimension_numbers<[1], [0], [0], [1], [0, 0, 1, 1], [], []>} : vector<4x4xf32>, vector<4x434xf32>, vector<4x434xf32> -> vector<4x434xf32>
    %79 = arith.addf %74, %78 : vector<4x434xf32>
    %c5_58 = arith.constant 5 : index
    %c0_59 = arith.constant 0 : index
    %c0_60 = arith.constant 0 : index
    %80 = vector.load %arg2[%c5_58, %c0_59, %c0_60] : memref<9x4x4xf32, #tpu.memory_space<vmem>>, vector<1x4x4xf32>
    %81 = vector.shape_cast %80 : vector<1x4x4xf32> to vector<4x4xf32>
    %82 = vector.extract_strided_slice %53 {offsets = [0, 26], sizes = [4, 434], strides = [1, 1]} : vector<4x504xf32> to vector<4x434xf32>
    %cst_61 = arith.constant dense<0.000000e+00> : vector<4x434xf32>
    %83 = tpu.matmul %81, %82, %cst_61 {dimension_numbers = #tpu.dot_dimension_numbers<[1], [0], [0], [1], [0, 0, 1, 1], [], []>} : vector<4x4xf32>, vector<4x434xf32>, vector<4x434xf32> -> vector<4x434xf32>
    %84 = arith.addf %79, %83 : vector<4x434xf32>
    %c6_62 = arith.constant 6 : index
    %c0_63 = arith.constant 0 : index
    %c0_64 = arith.constant 0 : index
    %85 = vector.load %arg2[%c6_62, %c0_63, %c0_64] : memref<9x4x4xf32, #tpu.memory_space<vmem>>, vector<1x4x4xf32>
    %86 = vector.shape_cast %85 : vector<1x4x4xf32> to vector<4x4xf32>
    %87 = vector.extract_strided_slice %53 {offsets = [0, 48], sizes = [4, 434], strides = [1, 1]} : vector<4x504xf32> to vector<4x434xf32>
    %cst_65 = arith.constant dense<0.000000e+00> : vector<4x434xf32>
    %88 = tpu.matmul %86, %87, %cst_65 {dimension_numbers = #tpu.dot_dimension_numbers<[1], [0], [0], [1], [0, 0, 1, 1], [], []>} : vector<4x4xf32>, vector<4x434xf32>, vector<4x434xf32> -> vector<4x434xf32>
    %89 = arith.addf %84, %88 : vector<4x434xf32>
    %c7_66 = arith.constant 7 : index
    %c0_67 = arith.constant 0 : index
    %c0_68 = arith.constant 0 : index
    %90 = vector.load %arg2[%c7_66, %c0_67, %c0_68] : memref<9x4x4xf32, #tpu.memory_space<vmem>>, vector<1x4x4xf32>
    %91 = vector.shape_cast %90 : vector<1x4x4xf32> to vector<4x4xf32>
    %92 = vector.extract_strided_slice %53 {offsets = [0, 49], sizes = [4, 434], strides = [1, 1]} : vector<4x504xf32> to vector<4x434xf32>
    %cst_69 = arith.constant dense<0.000000e+00> : vector<4x434xf32>
    %93 = tpu.matmul %91, %92, %cst_69 {dimension_numbers = #tpu.dot_dimension_numbers<[1], [0], [0], [1], [0, 0, 1, 1], [], []>} : vector<4x4xf32>, vector<4x434xf32>, vector<4x434xf32> -> vector<4x434xf32>
    %94 = arith.addf %89, %93 : vector<4x434xf32>
    %c8_70 = arith.constant 8 : index
    %c0_71 = arith.constant 0 : index
    %c0_72 = arith.constant 0 : index
    %95 = vector.load %arg2[%c8_70, %c0_71, %c0_72] : memref<9x4x4xf32, #tpu.memory_space<vmem>>, vector<1x4x4xf32>
    %96 = vector.shape_cast %95 : vector<1x4x4xf32> to vector<4x4xf32>
    %97 = vector.extract_strided_slice %53 {offsets = [0, 50], sizes = [4, 434], strides = [1, 1]} : vector<4x504xf32> to vector<4x434xf32>
    %cst_73 = arith.constant dense<0.000000e+00> : vector<4x434xf32>
    %98 = tpu.matmul %96, %97, %cst_73 {dimension_numbers = #tpu.dot_dimension_numbers<[1], [0], [0], [1], [0, 0, 1, 1], [], []>} : vector<4x4xf32>, vector<4x434xf32>, vector<4x434xf32> -> vector<4x434xf32>
    %99 = arith.addf %94, %98 : vector<4x434xf32>
    %100 = vector.broadcast %0 : vector<1x434xf32> to vector<4x434xf32>
    %101 = arith.mulf %99, %100 : vector<4x434xf32>
    %cst_74 = arith.constant 0.000000e+00 : f32
    %102 = vector.broadcast %cst_74 : f32 to vector<4x1xf32>
    %cst_75 = arith.constant 0.000000e+00 : f32
    %103 = vector.broadcast %cst_75 : f32 to vector<4x1xf32>
    %cst_76 = arith.constant dense<0.000000e+00> : vector<4xf32>
    %104 = vector.multi_reduction <add>, %51, %cst_76 [1] : vector<4x434xf32> to vector<4xf32>
    %105 = vector.shape_cast %104 : vector<4xf32> to vector<4x1xf32>
    %106 = arith.addf %102, %105 : vector<4x1xf32>
    %107 = arith.mulf %51, %51 : vector<4x434xf32>
    %cst_77 = arith.constant dense<0.000000e+00> : vector<4xf32>
    %108 = vector.multi_reduction <add>, %107, %cst_77 [1] : vector<4x434xf32> to vector<4xf32>
    %109 = vector.shape_cast %108 : vector<4xf32> to vector<4x1xf32>
    %110 = arith.addf %103, %109 : vector<4x1xf32>
    %cst_78 = arith.constant dense<0.000000e+00> : vector<4xf32>
    %111 = vector.multi_reduction <add>, %101, %cst_78 [1] : vector<4x434xf32> to vector<4xf32>
    %112 = vector.shape_cast %111 : vector<4xf32> to vector<4x1xf32>
    %113 = arith.addf %106, %112 : vector<4x1xf32>
    %114 = arith.mulf %101, %101 : vector<4x434xf32>
    %cst_79 = arith.constant dense<0.000000e+00> : vector<4xf32>
    %115 = vector.multi_reduction <add>, %114, %cst_79 [1] : vector<4x434xf32> to vector<4xf32>
    %116 = vector.shape_cast %115 : vector<4xf32> to vector<4x1xf32>
    %117 = arith.addf %110, %116 : vector<4x1xf32>
    %cst_80 = arith.constant 0.001953125 : f32
    %118 = vector.broadcast %cst_80 : f32 to vector<4x1xf32>
    %119 = arith.mulf %113, %118 : vector<4x1xf32>
    %cst_81 = arith.constant 0.001953125 : f32
    %120 = vector.broadcast %cst_81 : f32 to vector<4x1xf32>
    %121 = arith.mulf %117, %120 : vector<4x1xf32>
    %122 = arith.mulf %119, %119 : vector<4x1xf32>
    %123 = arith.subf %121, %122 : vector<4x1xf32>
    %c0_82 = arith.constant 0 : index
    %c0_83 = arith.constant 0 : index
    %124 = vector.load %arg4[%c0_82, %c0_83] : memref<4x1xf32, #tpu.memory_space<vmem>>, vector<4x1xf32>
    %cst_84 = arith.constant 9.99999974E-6 : f32
    %125 = vector.broadcast %cst_84 : f32 to vector<4x1xf32>
    %126 = arith.addf %123, %125 : vector<4x1xf32>
    %127 = math.rsqrt %126 : vector<4x1xf32>
    %128 = arith.mulf %124, %127 : vector<4x1xf32>
    %c0_85 = arith.constant 0 : index
    %c0_86 = arith.constant 0 : index
    %129 = vector.load %arg5[%c0_85, %c0_86] : memref<4x1xf32, #tpu.memory_space<vmem>>, vector<4x1xf32>
    %130 = arith.mulf %119, %128 : vector<4x1xf32>
    %131 = arith.subf %129, %130 : vector<4x1xf32>
    %132 = vector.broadcast %128 : vector<4x1xf32> to vector<4x434xf32>
    %133 = arith.mulf %51, %132 : vector<4x434xf32>
    %134 = vector.broadcast %131 : vector<4x1xf32> to vector<4x434xf32>
    %135 = arith.addf %133, %134 : vector<4x434xf32>
    %cst_87 = arith.constant 0.000000e+00 : f32
    %136 = vector.broadcast %cst_87 : f32 to vector<4x434xf32>
    %137 = arith.maximumf %135, %136 : vector<4x434xf32>
    %138 = vector.broadcast %0 : vector<1x434xf32> to vector<4x434xf32>
    %139 = arith.mulf %137, %138 : vector<4x434xf32>
    %140 = vector.broadcast %128 : vector<4x1xf32> to vector<4x434xf32>
    %141 = arith.mulf %101, %140 : vector<4x434xf32>
    %142 = vector.broadcast %131 : vector<4x1xf32> to vector<4x434xf32>
    %143 = arith.addf %141, %142 : vector<4x434xf32>
    %cst_88 = arith.constant 0.000000e+00 : f32
    %144 = vector.broadcast %cst_88 : f32 to vector<4x434xf32>
    %145 = arith.maximumf %143, %144 : vector<4x434xf32>
    %146 = vector.broadcast %0 : vector<1x434xf32> to vector<4x434xf32>
    %147 = arith.mulf %145, %146 : vector<4x434xf32>
    %cst_89 = arith.constant 0.000000e+00 : f32
    %148 = vector.broadcast %cst_89 : f32 to vector<8x384xf32>
    %c0_90 = arith.constant 0 : index
    %c0_91 = arith.constant 0 : index
    %c0_92 = arith.constant 0 : index
    %149 = vector.load %arg3[%c0_90, %c0_91, %c0_92] : memref<9x8x4xf32, #tpu.memory_space<vmem>>, vector<1x8x4xf32>
    %150 = vector.shape_cast %149 : vector<1x8x4xf32> to vector<8x4xf32>
    %151 = vector.extract_strided_slice %139 {offsets = [0, 0], sizes = [4, 384], strides = [1, 1]} : vector<4x434xf32> to vector<4x384xf32>
    %cst_93 = arith.constant dense<0.000000e+00> : vector<8x384xf32>
    %152 = tpu.matmul %150, %151, %cst_93 {dimension_numbers = #tpu.dot_dimension_numbers<[1], [0], [0], [1], [0, 0, 1, 1], [], []>} : vector<8x4xf32>, vector<4x384xf32>, vector<8x384xf32> -> vector<8x384xf32>
    %153 = arith.addf %148, %152 : vector<8x384xf32>
    %c1_94 = arith.constant 1 : index
    %c0_95 = arith.constant 0 : index
    %c0_96 = arith.constant 0 : index
    %154 = vector.load %arg3[%c1_94, %c0_95, %c0_96] : memref<9x8x4xf32, #tpu.memory_space<vmem>>, vector<1x8x4xf32>
    %155 = vector.shape_cast %154 : vector<1x8x4xf32> to vector<8x4xf32>
    %156 = vector.extract_strided_slice %139 {offsets = [0, 1], sizes = [4, 384], strides = [1, 1]} : vector<4x434xf32> to vector<4x384xf32>
    %cst_97 = arith.constant dense<0.000000e+00> : vector<8x384xf32>
    %157 = tpu.matmul %155, %156, %cst_97 {dimension_numbers = #tpu.dot_dimension_numbers<[1], [0], [0], [1], [0, 0, 1, 1], [], []>} : vector<8x4xf32>, vector<4x384xf32>, vector<8x384xf32> -> vector<8x384xf32>
    %158 = arith.addf %153, %157 : vector<8x384xf32>
    %c2_98 = arith.constant 2 : index
    %c0_99 = arith.constant 0 : index
    %c0_100 = arith.constant 0 : index
    %159 = vector.load %arg3[%c2_98, %c0_99, %c0_100] : memref<9x8x4xf32, #tpu.memory_space<vmem>>, vector<1x8x4xf32>
    %160 = vector.shape_cast %159 : vector<1x8x4xf32> to vector<8x4xf32>
    %161 = vector.extract_strided_slice %139 {offsets = [0, 2], sizes = [4, 384], strides = [1, 1]} : vector<4x434xf32> to vector<4x384xf32>
    %cst_101 = arith.constant dense<0.000000e+00> : vector<8x384xf32>
    %162 = tpu.matmul %160, %161, %cst_101 {dimension_numbers = #tpu.dot_dimension_numbers<[1], [0], [0], [1], [0, 0, 1, 1], [], []>} : vector<8x4xf32>, vector<4x384xf32>, vector<8x384xf32> -> vector<8x384xf32>
    %163 = arith.addf %158, %162 : vector<8x384xf32>
    %c3_102 = arith.constant 3 : index
    %c0_103 = arith.constant 0 : index
    %c0_104 = arith.constant 0 : index
    %164 = vector.load %arg3[%c3_102, %c0_103, %c0_104] : memref<9x8x4xf32, #tpu.memory_space<vmem>>, vector<1x8x4xf32>
    %165 = vector.shape_cast %164 : vector<1x8x4xf32> to vector<8x4xf32>
    %166 = vector.extract_strided_slice %139 {offsets = [0, 24], sizes = [4, 384], strides = [1, 1]} : vector<4x434xf32> to vector<4x384xf32>
    %cst_105 = arith.constant dense<0.000000e+00> : vector<8x384xf32>
    %167 = tpu.matmul %165, %166, %cst_105 {dimension_numbers = #tpu.dot_dimension_numbers<[1], [0], [0], [1], [0, 0, 1, 1], [], []>} : vector<8x4xf32>, vector<4x384xf32>, vector<8x384xf32> -> vector<8x384xf32>
    %168 = arith.addf %163, %167 : vector<8x384xf32>
    %c4_106 = arith.constant 4 : index
    %c0_107 = arith.constant 0 : index
    %c0_108 = arith.constant 0 : index
    %169 = vector.load %arg3[%c4_106, %c0_107, %c0_108] : memref<9x8x4xf32, #tpu.memory_space<vmem>>, vector<1x8x4xf32>
    %170 = vector.shape_cast %169 : vector<1x8x4xf32> to vector<8x4xf32>
    %171 = vector.extract_strided_slice %139 {offsets = [0, 25], sizes = [4, 384], strides = [1, 1]} : vector<4x434xf32> to vector<4x384xf32>
    %cst_109 = arith.constant dense<0.000000e+00> : vector<8x384xf32>
    %172 = tpu.matmul %170, %171, %cst_109 {dimension_numbers = #tpu.dot_dimension_numbers<[1], [0], [0], [1], [0, 0, 1, 1], [], []>} : vector<8x4xf32>, vector<4x384xf32>, vector<8x384xf32> -> vector<8x384xf32>
    %173 = arith.addf %168, %172 : vector<8x384xf32>
    %c5_110 = arith.constant 5 : index
    %c0_111 = arith.constant 0 : index
    %c0_112 = arith.constant 0 : index
    %174 = vector.load %arg3[%c5_110, %c0_111, %c0_112] : memref<9x8x4xf32, #tpu.memory_space<vmem>>, vector<1x8x4xf32>
    %175 = vector.shape_cast %174 : vector<1x8x4xf32> to vector<8x4xf32>
    %176 = vector.extract_strided_slice %139 {offsets = [0, 26], sizes = [4, 384], strides = [1, 1]} : vector<4x434xf32> to vector<4x384xf32>
    %cst_113 = arith.constant dense<0.000000e+00> : vector<8x384xf32>
    %177 = tpu.matmul %175, %176, %cst_113 {dimension_numbers = #tpu.dot_dimension_numbers<[1], [0], [0], [1], [0, 0, 1, 1], [], []>} : vector<8x4xf32>, vector<4x384xf32>, vector<8x384xf32> -> vector<8x384xf32>
    %178 = arith.addf %173, %177 : vector<8x384xf32>
    %c6_114 = arith.constant 6 : index
    %c0_115 = arith.constant 0 : index
    %c0_116 = arith.constant 0 : index
    %179 = vector.load %arg3[%c6_114, %c0_115, %c0_116] : memref<9x8x4xf32, #tpu.memory_space<vmem>>, vector<1x8x4xf32>
    %180 = vector.shape_cast %179 : vector<1x8x4xf32> to vector<8x4xf32>
    %181 = vector.extract_strided_slice %139 {offsets = [0, 48], sizes = [4, 384], strides = [1, 1]} : vector<4x434xf32> to vector<4x384xf32>
    %cst_117 = arith.constant dense<0.000000e+00> : vector<8x384xf32>
    %182 = tpu.matmul %180, %181, %cst_117 {dimension_numbers = #tpu.dot_dimension_numbers<[1], [0], [0], [1], [0, 0, 1, 1], [], []>} : vector<8x4xf32>, vector<4x384xf32>, vector<8x384xf32> -> vector<8x384xf32>
    %183 = arith.addf %178, %182 : vector<8x384xf32>
    %c7_118 = arith.constant 7 : index
    %c0_119 = arith.constant 0 : index
    %c0_120 = arith.constant 0 : index
    %184 = vector.load %arg3[%c7_118, %c0_119, %c0_120] : memref<9x8x4xf32, #tpu.memory_space<vmem>>, vector<1x8x4xf32>
    %185 = vector.shape_cast %184 : vector<1x8x4xf32> to vector<8x4xf32>
    %186 = vector.extract_strided_slice %139 {offsets = [0, 49], sizes = [4, 384], strides = [1, 1]} : vector<4x434xf32> to vector<4x384xf32>
    %cst_121 = arith.constant dense<0.000000e+00> : vector<8x384xf32>
    %187 = tpu.matmul %185, %186, %cst_121 {dimension_numbers = #tpu.dot_dimension_numbers<[1], [0], [0], [1], [0, 0, 1, 1], [], []>} : vector<8x4xf32>, vector<4x384xf32>, vector<8x384xf32> -> vector<8x384xf32>
    %188 = arith.addf %183, %187 : vector<8x384xf32>
    %c8_122 = arith.constant 8 : index
    %c0_123 = arith.constant 0 : index
    %c0_124 = arith.constant 0 : index
    %189 = vector.load %arg3[%c8_122, %c0_123, %c0_124] : memref<9x8x4xf32, #tpu.memory_space<vmem>>, vector<1x8x4xf32>
    %190 = vector.shape_cast %189 : vector<1x8x4xf32> to vector<8x4xf32>
    %191 = vector.extract_strided_slice %139 {offsets = [0, 50], sizes = [4, 384], strides = [1, 1]} : vector<4x434xf32> to vector<4x384xf32>
    %cst_125 = arith.constant dense<0.000000e+00> : vector<8x384xf32>
    %192 = tpu.matmul %190, %191, %cst_125 {dimension_numbers = #tpu.dot_dimension_numbers<[1], [0], [0], [1], [0, 0, 1, 1], [], []>} : vector<8x4xf32>, vector<4x384xf32>, vector<8x384xf32> -> vector<8x384xf32>
    %193 = arith.addf %188, %192 : vector<8x384xf32>
    %cst_126 = arith.constant 0.000000e+00 : f32
    %194 = vector.broadcast %cst_126 : f32 to vector<8x384xf32>
    %c0_127 = arith.constant 0 : index
    %c0_128 = arith.constant 0 : index
    %c0_129 = arith.constant 0 : index
    %195 = vector.load %arg3[%c0_127, %c0_128, %c0_129] : memref<9x8x4xf32, #tpu.memory_space<vmem>>, vector<1x8x4xf32>
    %196 = vector.shape_cast %195 : vector<1x8x4xf32> to vector<8x4xf32>
    %197 = vector.extract_strided_slice %147 {offsets = [0, 0], sizes = [4, 384], strides = [1, 1]} : vector<4x434xf32> to vector<4x384xf32>
    %cst_130 = arith.constant dense<0.000000e+00> : vector<8x384xf32>
    %198 = tpu.matmul %196, %197, %cst_130 {dimension_numbers = #tpu.dot_dimension_numbers<[1], [0], [0], [1], [0, 0, 1, 1], [], []>} : vector<8x4xf32>, vector<4x384xf32>, vector<8x384xf32> -> vector<8x384xf32>
    %199 = arith.addf %194, %198 : vector<8x384xf32>
    %c1_131 = arith.constant 1 : index
    %c0_132 = arith.constant 0 : index
    %c0_133 = arith.constant 0 : index
    %200 = vector.load %arg3[%c1_131, %c0_132, %c0_133] : memref<9x8x4xf32, #tpu.memory_space<vmem>>, vector<1x8x4xf32>
    %201 = vector.shape_cast %200 : vector<1x8x4xf32> to vector<8x4xf32>
    %202 = vector.extract_strided_slice %147 {offsets = [0, 1], sizes = [4, 384], strides = [1, 1]} : vector<4x434xf32> to vector<4x384xf32>
    %cst_134 = arith.constant dense<0.000000e+00> : vector<8x384xf32>
    %203 = tpu.matmul %201, %202, %cst_134 {dimension_numbers = #tpu.dot_dimension_numbers<[1], [0], [0], [1], [0, 0, 1, 1], [], []>} : vector<8x4xf32>, vector<4x384xf32>, vector<8x384xf32> -> vector<8x384xf32>
    %204 = arith.addf %199, %203 : vector<8x384xf32>
    %c2_135 = arith.constant 2 : index
    %c0_136 = arith.constant 0 : index
    %c0_137 = arith.constant 0 : index
    %205 = vector.load %arg3[%c2_135, %c0_136, %c0_137] : memref<9x8x4xf32, #tpu.memory_space<vmem>>, vector<1x8x4xf32>
    %206 = vector.shape_cast %205 : vector<1x8x4xf32> to vector<8x4xf32>
    %207 = vector.extract_strided_slice %147 {offsets = [0, 2], sizes = [4, 384], strides = [1, 1]} : vector<4x434xf32> to vector<4x384xf32>
    %cst_138 = arith.constant dense<0.000000e+00> : vector<8x384xf32>
    %208 = tpu.matmul %206, %207, %cst_138 {dimension_numbers = #tpu.dot_dimension_numbers<[1], [0], [0], [1], [0, 0, 1, 1], [], []>} : vector<8x4xf32>, vector<4x384xf32>, vector<8x384xf32> -> vector<8x384xf32>
    %209 = arith.addf %204, %208 : vector<8x384xf32>
    %c3_139 = arith.constant 3 : index
    %c0_140 = arith.constant 0 : index
    %c0_141 = arith.constant 0 : index
    %210 = vector.load %arg3[%c3_139, %c0_140, %c0_141] : memref<9x8x4xf32, #tpu.memory_space<vmem>>, vector<1x8x4xf32>
    %211 = vector.shape_cast %210 : vector<1x8x4xf32> to vector<8x4xf32>
    %212 = vector.extract_strided_slice %147 {offsets = [0, 24], sizes = [4, 384], strides = [1, 1]} : vector<4x434xf32> to vector<4x384xf32>
    %cst_142 = arith.constant dense<0.000000e+00> : vector<8x384xf32>
    %213 = tpu.matmul %211, %212, %cst_142 {dimension_numbers = #tpu.dot_dimension_numbers<[1], [0], [0], [1], [0, 0, 1, 1], [], []>} : vector<8x4xf32>, vector<4x384xf32>, vector<8x384xf32> -> vector<8x384xf32>
    %214 = arith.addf %209, %213 : vector<8x384xf32>
    %c4_143 = arith.constant 4 : index
    %c0_144 = arith.constant 0 : index
    %c0_145 = arith.constant 0 : index
    %215 = vector.load %arg3[%c4_143, %c0_144, %c0_145] : memref<9x8x4xf32, #tpu.memory_space<vmem>>, vector<1x8x4xf32>
    %216 = vector.shape_cast %215 : vector<1x8x4xf32> to vector<8x4xf32>
    %217 = vector.extract_strided_slice %147 {offsets = [0, 25], sizes = [4, 384], strides = [1, 1]} : vector<4x434xf32> to vector<4x384xf32>
    %cst_146 = arith.constant dense<0.000000e+00> : vector<8x384xf32>
    %218 = tpu.matmul %216, %217, %cst_146 {dimension_numbers = #tpu.dot_dimension_numbers<[1], [0], [0], [1], [0, 0, 1, 1], [], []>} : vector<8x4xf32>, vector<4x384xf32>, vector<8x384xf32> -> vector<8x384xf32>
    %219 = arith.addf %214, %218 : vector<8x384xf32>
    %c5_147 = arith.constant 5 : index
    %c0_148 = arith.constant 0 : index
    %c0_149 = arith.constant 0 : index
    %220 = vector.load %arg3[%c5_147, %c0_148, %c0_149] : memref<9x8x4xf32, #tpu.memory_space<vmem>>, vector<1x8x4xf32>
    %221 = vector.shape_cast %220 : vector<1x8x4xf32> to vector<8x4xf32>
    %222 = vector.extract_strided_slice %147 {offsets = [0, 26], sizes = [4, 384], strides = [1, 1]} : vector<4x434xf32> to vector<4x384xf32>
    %cst_150 = arith.constant dense<0.000000e+00> : vector<8x384xf32>
    %223 = tpu.matmul %221, %222, %cst_150 {dimension_numbers = #tpu.dot_dimension_numbers<[1], [0], [0], [1], [0, 0, 1, 1], [], []>} : vector<8x4xf32>, vector<4x384xf32>, vector<8x384xf32> -> vector<8x384xf32>
    %224 = arith.addf %219, %223 : vector<8x384xf32>
    %c6_151 = arith.constant 6 : index
    %c0_152 = arith.constant 0 : index
    %c0_153 = arith.constant 0 : index
    %225 = vector.load %arg3[%c6_151, %c0_152, %c0_153] : memref<9x8x4xf32, #tpu.memory_space<vmem>>, vector<1x8x4xf32>
    %226 = vector.shape_cast %225 : vector<1x8x4xf32> to vector<8x4xf32>
    %227 = vector.extract_strided_slice %147 {offsets = [0, 48], sizes = [4, 384], strides = [1, 1]} : vector<4x434xf32> to vector<4x384xf32>
    %cst_154 = arith.constant dense<0.000000e+00> : vector<8x384xf32>
    %228 = tpu.matmul %226, %227, %cst_154 {dimension_numbers = #tpu.dot_dimension_numbers<[1], [0], [0], [1], [0, 0, 1, 1], [], []>} : vector<8x4xf32>, vector<4x384xf32>, vector<8x384xf32> -> vector<8x384xf32>
    %229 = arith.addf %224, %228 : vector<8x384xf32>
    %c7_155 = arith.constant 7 : index
    %c0_156 = arith.constant 0 : index
    %c0_157 = arith.constant 0 : index
    %230 = vector.load %arg3[%c7_155, %c0_156, %c0_157] : memref<9x8x4xf32, #tpu.memory_space<vmem>>, vector<1x8x4xf32>
    %231 = vector.shape_cast %230 : vector<1x8x4xf32> to vector<8x4xf32>
    %232 = vector.extract_strided_slice %147 {offsets = [0, 49], sizes = [4, 384], strides = [1, 1]} : vector<4x434xf32> to vector<4x384xf32>
    %cst_158 = arith.constant dense<0.000000e+00> : vector<8x384xf32>
    %233 = tpu.matmul %231, %232, %cst_158 {dimension_numbers = #tpu.dot_dimension_numbers<[1], [0], [0], [1], [0, 0, 1, 1], [], []>} : vector<8x4xf32>, vector<4x384xf32>, vector<8x384xf32> -> vector<8x384xf32>
    %234 = arith.addf %229, %233 : vector<8x384xf32>
    %c8_159 = arith.constant 8 : index
    %c0_160 = arith.constant 0 : index
    %c0_161 = arith.constant 0 : index
    %235 = vector.load %arg3[%c8_159, %c0_160, %c0_161] : memref<9x8x4xf32, #tpu.memory_space<vmem>>, vector<1x8x4xf32>
    %236 = vector.shape_cast %235 : vector<1x8x4xf32> to vector<8x4xf32>
    %237 = vector.extract_strided_slice %147 {offsets = [0, 50], sizes = [4, 384], strides = [1, 1]} : vector<4x434xf32> to vector<4x384xf32>
    %cst_162 = arith.constant dense<0.000000e+00> : vector<8x384xf32>
    %238 = tpu.matmul %236, %237, %cst_162 {dimension_numbers = #tpu.dot_dimension_numbers<[1], [0], [0], [1], [0, 0, 1, 1], [], []>} : vector<8x4xf32>, vector<4x384xf32>, vector<8x384xf32> -> vector<8x384xf32>
    %239 = arith.addf %234, %238 : vector<8x384xf32>
    %cst_163 = arith.constant 0.000000e+00 : f32
    %240 = vector.broadcast %cst_163 : f32 to vector<8x1xf32>
    %cst_164 = arith.constant 0.000000e+00 : f32
    %241 = vector.broadcast %cst_164 : f32 to vector<8x1xf32>
    %242 = vector.broadcast %1 : vector<1x384xf32> to vector<8x384xf32>
    %243 = arith.mulf %193, %242 : vector<8x384xf32>
    %cst_165 = arith.constant dense<0.000000e+00> : vector<8xf32>
    %244 = vector.multi_reduction <add>, %243, %cst_165 [1] : vector<8x384xf32> to vector<8xf32>
    %245 = vector.shape_cast %244 : vector<8xf32> to vector<8x1xf32>
    %246 = arith.addf %240, %245 : vector<8x1xf32>
    %247 = arith.mulf %243, %243 : vector<8x384xf32>
    %cst_166 = arith.constant dense<0.000000e+00> : vector<8xf32>
    %248 = vector.multi_reduction <add>, %247, %cst_166 [1] : vector<8x384xf32> to vector<8xf32>
    %249 = vector.shape_cast %248 : vector<8xf32> to vector<8x1xf32>
    %250 = arith.addf %241, %249 : vector<8x1xf32>
    %251 = vector.broadcast %1 : vector<1x384xf32> to vector<8x384xf32>
    %252 = arith.mulf %239, %251 : vector<8x384xf32>
    %cst_167 = arith.constant dense<0.000000e+00> : vector<8xf32>
    %253 = vector.multi_reduction <add>, %252, %cst_167 [1] : vector<8x384xf32> to vector<8xf32>
    %254 = vector.shape_cast %253 : vector<8xf32> to vector<8x1xf32>
    %255 = arith.addf %246, %254 : vector<8x1xf32>
    %256 = arith.mulf %252, %252 : vector<8x384xf32>
    %cst_168 = arith.constant dense<0.000000e+00> : vector<8xf32>
    %257 = vector.multi_reduction <add>, %256, %cst_168 [1] : vector<8x384xf32> to vector<8xf32>
    %258 = vector.shape_cast %257 : vector<8xf32> to vector<8x1xf32>
    %259 = arith.addf %250, %258 : vector<8x1xf32>
    %cst_169 = arith.constant 0.001953125 : f32
    %260 = vector.broadcast %cst_169 : f32 to vector<8x1xf32>
    %261 = arith.mulf %255, %260 : vector<8x1xf32>
    %cst_170 = arith.constant 0.001953125 : f32
    %262 = vector.broadcast %cst_170 : f32 to vector<8x1xf32>
    %263 = arith.mulf %259, %262 : vector<8x1xf32>
    %264 = arith.mulf %261, %261 : vector<8x1xf32>
    %265 = arith.subf %263, %264 : vector<8x1xf32>
    %c0_171 = arith.constant 0 : index
    %c0_172 = arith.constant 0 : index
    %266 = vector.load %arg6[%c0_171, %c0_172] : memref<8x1xf32, #tpu.memory_space<vmem>>, vector<8x1xf32>
    %cst_173 = arith.constant 9.99999974E-6 : f32
    %267 = vector.broadcast %cst_173 : f32 to vector<8x1xf32>
    %268 = arith.addf %265, %267 : vector<8x1xf32>
    %269 = math.rsqrt %268 : vector<8x1xf32>
    %270 = arith.mulf %266, %269 : vector<8x1xf32>
    %c0_174 = arith.constant 0 : index
    %c0_175 = arith.constant 0 : index
    %271 = vector.load %arg7[%c0_174, %c0_175] : memref<8x1xf32, #tpu.memory_space<vmem>>, vector<8x1xf32>
    %272 = arith.mulf %261, %270 : vector<8x1xf32>
    %273 = arith.subf %271, %272 : vector<8x1xf32>
    %274 = vector.broadcast %270 : vector<8x1xf32> to vector<8x384xf32>
    %275 = arith.mulf %193, %274 : vector<8x384xf32>
    %276 = vector.broadcast %273 : vector<8x1xf32> to vector<8x384xf32>
    %277 = arith.addf %275, %276 : vector<8x384xf32>
    %cst_176 = arith.constant 0.000000e+00 : f32
    %278 = vector.broadcast %cst_176 : f32 to vector<8x384xf32>
    %279 = arith.maximumf %277, %278 : vector<8x384xf32>
    %c0_177 = arith.constant 0 : index
    %c0_178 = arith.constant 0 : index
    %c0_179 = arith.constant 0 : index
    %280 = vector.load %arg10[%c0_177, %c0_178, %c0_179] : memref<2x8x384xf32, #tpu.memory_space<vmem>>, vector<1x8x384xf32>
    %281 = vector.shape_cast %280 : vector<1x8x384xf32> to vector<8x384xf32>
    %282 = vector.shape_cast %279 : vector<8x384xf32> to vector<1x8x384xf32>
    tpu.vector_store %arg10[%c0_177, %c0_178, %c0_179], %282 {strides = array<i32>} : memref<2x8x384xf32, #tpu.memory_space<vmem>>, vector<1x8x384xf32>,
    %283 = vector.broadcast %270 : vector<8x1xf32> to vector<8x384xf32>
    %284 = arith.mulf %239, %283 : vector<8x384xf32>
    %285 = vector.broadcast %273 : vector<8x1xf32> to vector<8x384xf32>
    %286 = arith.addf %284, %285 : vector<8x384xf32>
    %cst_180 = arith.constant 0.000000e+00 : f32
    %287 = vector.broadcast %cst_180 : f32 to vector<8x384xf32>
    %288 = arith.maximumf %286, %287 : vector<8x384xf32>
    %c1_181 = arith.constant 1 : index
    %c0_182 = arith.constant 0 : index
    %c0_183 = arith.constant 0 : index
    %289 = vector.load %arg10[%c1_181, %c0_182, %c0_183] : memref<2x8x384xf32, #tpu.memory_space<vmem>>, vector<1x8x384xf32>
    %290 = vector.shape_cast %289 : vector<1x8x384xf32> to vector<8x384xf32>
    %291 = vector.shape_cast %288 : vector<8x384xf32> to vector<1x8x384xf32>
    tpu.vector_store %arg10[%c1_181, %c0_182, %c0_183], %291 {strides = array<i32>} : memref<2x8x384xf32, #tpu.memory_space<vmem>>, vector<1x8x384xf32>,
    return
  }
  func.func @transform_0(%arg0: i32) -> (i32, i32, i32) {
    %c0_i32 = arith.constant 0 : i32
    %c0_i32_0 = arith.constant 0 : i32
    %c0_i32_1 = arith.constant 0 : i32
    %c0_i32_2 = arith.constant 0 : i32
    return %c0_i32, %c0_i32_0, %c0_i32_1 : i32, i32, i32
  }
  func.func @transform_1(%arg0: i32) -> (i32, i32, i32) {
    %c0_i32 = arith.constant 0 : i32
    %c0_i32_0 = arith.constant 0 : i32
    %c0_i32_1 = arith.constant 0 : i32
    %c0_i32_2 = arith.constant 0 : i32
    return %c0_i32, %c0_i32_0, %c0_i32_1 : i32, i32, i32
  }
  func.func @transform_2(%arg0: i32) -> (i32, i32, i32) {
    %c0_i32 = arith.constant 0 : i32
    %c0_i32_0 = arith.constant 0 : i32
    %c0_i32_1 = arith.constant 0 : i32
    %c0_i32_2 = arith.constant 0 : i32
    return %c0_i32, %c0_i32_0, %c0_i32_1 : i32, i32, i32
  }
  func.func @transform_3(%arg0: i32) -> (i32, i32) {
    %c0_i32 = arith.constant 0 : i32
    %c0_i32_0 = arith.constant 0 : i32
    %c0_i32_1 = arith.constant 0 : i32
    return %c0_i32, %c0_i32_0 : i32, i32
  }
  func.func @transform_4(%arg0: i32) -> (i32, i32) {
    %c0_i32 = arith.constant 0 : i32
    %c0_i32_0 = arith.constant 0 : i32
    %c0_i32_1 = arith.constant 0 : i32
    return %c0_i32, %c0_i32_0 : i32, i32
  }
  func.func @transform_5(%arg0: i32) -> (i32, i32) {
    %c0_i32 = arith.constant 0 : i32
    %c0_i32_0 = arith.constant 0 : i32
    %c0_i32_1 = arith.constant 0 : i32
    return %c0_i32, %c0_i32_0 : i32, i32
  }
  func.func @transform_6(%arg0: i32) -> (i32, i32) {
    %c0_i32 = arith.constant 0 : i32
    %c0_i32_0 = arith.constant 0 : i32
    %c0_i32_1 = arith.constant 0 : i32
    return %c0_i32, %c0_i32_0 : i32, i32
  }
  func.func @transform_7(%arg0: i32) -> (i32, i32) {
    %c0_i32 = arith.constant 0 : i32
    %c0_i32_0 = arith.constant 0 : i32
    %c0_i32_1 = arith.constant 0 : i32
    return %c0_i32, %c0_i32_0 : i32, i32
  }
  func.func @transform_8(%arg0: i32) -> (i32, i32) {
    %c0_i32 = arith.constant 0 : i32
    %c0_i32_0 = arith.constant 0 : i32
    %c0_i32_1 = arith.constant 0 : i32
    return %c0_i32, %c0_i32_0 : i32, i32
  }
  func.func @transform_9(%arg0: i32) -> (i32, i32, i32) {
    %c0_i32 = arith.constant 0 : i32
    %c0_i32_0 = arith.constant 0 : i32
    %c0_i32_1 = arith.constant 0 : i32
    %c0_i32_2 = arith.constant 0 : i32
    return %c0_i32, %c0_i32_0, %c0_i32_1 : i32, i32, i32
  }
}

</mosaic_0001>

<bundles_post_ra>
// kernel: upconv2_forward.1
= control target key start
LH: loop header
LB: loop body
LE: loop exit
PB: predicated region body
PF: predicated region fallthrough
CT: control target
= control target key end

     0   :  { %v6672_v2 = vmov 0.0   ;;  %s6673_s13 = smov 127   ;;  %s6674_s14 = smov 126   ;;  %vm59_vm0 = vcmask 1043456   ;;  %vm51_vm1 = vcmask 1039360   ;;  %vm55_vm2 = vcmask 31744   ;;  %s7799_s0 = inlined_call_operand.vmem [shape: f32[2,4,504], index: 0, kind: input, shape index: {}]   ;;  %s7800_s1 = inlined_call_operand.vmem [shape: f32[9,4,4], index: 1, kind: input, shape index: {}]   ;;  %s7801_s7 = inlined_call_operand.vmem [shape: f32[1,434], index: 7, kind: input, shape index: {}]   ;;  %s7802_s3 = inlined_call_operand.vmem [shape: f32[4,1], index: 3, kind: input, shape index: {}]   ;;  %s7803_s4 = inlined_call_operand.vmem [shape: f32[4,1], index: 4, kind: input, shape index: {}]   ;;  %s7804_s2 = inlined_call_operand.vmem [shape: f32[9,8,4], index: 2, kind: input, shape index: {}]   ;;  %s7805_s8 = inlined_call_operand.vmem [shape: f32[1,384], index: 8, kind: input, shape index: {}]   ;;  %s7806_s5 = inlined_call_operand.vmem [shape: f32[8,1], index: 5, kind: input, shape index: {}]   ;;  %s7807_s6 = inlined_call_operand.vmem [shape: f32[8,1], index: 6, kind: input, shape index: {}]   ;;  %s7808_s9 = inlined_call_operand.vmem [shape: f32[2,8,384], index: 9, kind: output, shape index: {}]  }
   0x1   :  { %v6736_v0 = vld [vmem:[%s7799_s0] sm:$0xff]  ;;  %v6741_v1 = vld [vmem:[%s7799_s0 + $0x8] sm:$0xff]  ;;  %203 = vmatprep.mubr.f32.mxu1 %v6672_v2  ;;  %132 = vmatprep.mubr.f32.mxu0 %v6672_v2  ;;  %s6675_s15 = smov 104   ;;  %s6676_s16 = smov 103   ;;  %v6816_v5 = vld [vmem:[%s7799_s0 + $0x10] sm:$0xff]  ;;  %vm373_vm3 = vcmask 1031168  }
   0x2   :  { %43 = vrot.lane.b32.xlu1 %v6736_v0, %s6673_s13  ;;  %v6749_v3 = vcombine.high %v6736_v0, %v6736_v0  ;;  %v6753_v4 = vcombine.high %v6741_v1, %v6741_v1  ;;  %s6677_s17 = smov 102   ;;  %s6678_s18 = smov 80   ;;  %v6823_v6 = vld [vmem:[%s7799_s0 + $0x18] sm:$0xff]  ;;  %v6829_v7 = vcombine.high %v6816_v5, %v6816_v5  ;;  %v6895_v13 = vld [vmem:[%s7800_s1 + $0x4] sm:$0xf]  ;;  %vm544_vm4 = vcmask 850944  }
   0x3   :  { %s6679_s19 = smov 79   ;;  %s6680_s20 = smov 78   ;;  %v6835_v8 = vcombine.high %v6823_v6, %v6823_v6  ;;  %v6925_v22 = vld [vmem:[%s7800_s1] sm:$0xf]  ;;  %v6949_v30 = vld [vmem:[%s7800_s1 + $0x8] sm:$0xf] }
   0x4   :  { %45 = vrot.lane.b32.xlu0 %v6749_v3, %s6673_s13  ;;  %vm715_vm5 = vcmask 842752   ;;  %v6967_v38 = vld [vmem:[%s7800_s1 + $0xc] sm:$0xf]  ;;  %vm886_vm6 = vcmask 834560   ;;  %v6985_v46 = vld [vmem:[%s7800_s1 + $0x10] sm:$0xf] }
   0x5   :  { %vm1057_vm7 = vcmask 654336   ;;  %v7003_v54 = vld [vmem:[%s7800_s1 + $0x14] sm:$0xf]  ;;  %vm1228_vm8 = vcmask 646144   ;;  %v7021_v62 = vld [vmem:[%s7800_s1 + $0x18] sm:$0xf] }
   0x6   :  { %49 = vrot.lane.b32.xlu1 %v6753_v4, %s6673_s13  ;;  %vm1399_vm9 = vcmask 637952   ;;  %vm3067_vm10 = vcmask 404480   ;;  %vm6682_vm11 = vmmov 0  }
   0x8   :  { %47 = vrot.lane.b32.xlu0 %v6741_v1, %s6673_s13 }
   0xa   :  { %369 = vrot.lane.b32.xlu1 %v6741_v1, %s6674_s14 }
   0xc   :  { %367 = vrot.lane.b32.xlu0 %v6749_v3, %s6674_s14 }
   0xe   :  { %371 = vrot.lane.b32.xlu1 %v6753_v4, %s6674_s14 }
  0x10   :  { %365 = vrot.lane.b32.xlu0 %v6736_v0, %s6674_s14 }
  0x12   :  { %540 = vrot.lane.b32.xlu1 %v6741_v1, %s6675_s15 }
  0x14   :  { %538 = vrot.lane.b32.xlu0 %v6749_v3, %s6675_s15 }
  0x16   :  { %542 = vrot.lane.b32.xlu1 %v6753_v4, %s6675_s15 }
  0x18   :  { %536 = vrot.lane.b32.xlu0 %v6736_v0, %s6675_s15 }
  0x1a   :  { %711 = vrot.lane.b32.xlu1 %v6741_v1, %s6676_s16 }
  0x1c   :  { %709 = vrot.lane.b32.xlu0 %v6749_v3, %s6676_s16 }
  0x1e   :  { %713 = vrot.lane.b32.xlu1 %v6753_v4, %s6676_s16 }
  0x20   :  { %707 = vrot.lane.b32.xlu0 %v6736_v0, %s6676_s16 }
  0x22   :  { %882 = vrot.lane.b32.xlu1 %v6741_v1, %s6677_s17 }
  0x24   :  { %880 = vrot.lane.b32.xlu0 %v6749_v3, %s6677_s17 }
  0x26   :  { %884 = vrot.lane.b32.xlu1 %v6753_v4, %s6677_s17 }
  0x28   :  { %878 = vrot.lane.b32.xlu0 %v6736_v0, %s6677_s17 }
  0x2a   :  { %1053 = vrot.lane.b32.xlu1 %v6741_v1, %s6678_s18 }
  0x2c   :  { %1051 = vrot.lane.b32.xlu0 %v6749_v3, %s6678_s18 }
  0x2e   :  { %1055 = vrot.lane.b32.xlu1 %v6753_v4, %s6678_s18 }
  0x30   :  { %1049 = vrot.lane.b32.xlu0 %v6736_v0, %s6678_s18 }
  0x32   :  { %1224 = vrot.lane.b32.xlu1 %v6741_v1, %s6679_s19 }
  0x34   :  { %1222 = vrot.lane.b32.xlu0 %v6749_v3, %s6679_s19 }
  0x36   :  { %1226 = vrot.lane.b32.xlu1 %v6753_v4, %s6679_s19 }
  0x38   :  { %1220 = vrot.lane.b32.xlu0 %v6736_v0, %s6679_s19 }
  0x3a   :  { %1395 = vrot.lane.b32.xlu1 %v6741_v1, %s6680_s20 }
  0x3c   :  { %1393 = vrot.lane.b32.xlu0 %v6749_v3, %s6680_s20 }
  0x3e   :  { %1397 = vrot.lane.b32.xlu1 %v6753_v4, %s6680_s20 }
  0x40   :  { %1391 = vrot.lane.b32.xlu0 %v6736_v0, %s6680_s20 }
  0x42   :  { %1596 = vrot.lane.b32.xlu1 %v6823_v6, %s6673_s13 }
  0x44   :  { %1594 = vrot.lane.b32.xlu0 %v6829_v7, %s6673_s13 }
  0x46   :  { %1598 = vrot.lane.b32.xlu1 %v6835_v8, %s6673_s13 }
  0x48   :  { %1592 = vrot.lane.b32.xlu0 %v6816_v5, %s6673_s13 }
  0x4a   :  { %1907 = vrot.lane.b32.xlu1 %v6823_v6, %s6674_s14 }
  0x4c   :  { %1905 = vrot.lane.b32.xlu0 %v6829_v7, %s6674_s14 }
  0x4e   :  { %1909 = vrot.lane.b32.xlu1 %v6835_v8, %s6674_s14 }
  0x50   :  { %1903 = vrot.lane.b32.xlu0 %v6816_v5, %s6674_s14 }
  0x52   :  { %2072 = vrot.lane.b32.xlu1 %v6823_v6, %s6675_s15 }
  0x54   :  { %2070 = vrot.lane.b32.xlu0 %v6829_v7, %s6675_s15 }
  0x56   :  { %2074 = vrot.lane.b32.xlu1 %v6835_v8, %s6675_s15 }
  0x58   :  { %2068 = vrot.lane.b32.xlu0 %v6816_v5, %s6675_s15 }
  0x5a   :  { %2237 = vrot.lane.b32.xlu1 %v6823_v6, %s6676_s16 }
  0x5c   :  { %2235 = vrot.lane.b32.xlu0 %v6829_v7, %s6676_s16 }
  0x5e   :  { %2239 = vrot.lane.b32.xlu1 %v6835_v8, %s6676_s16 }
  0x60   :  { %2233 = vrot.lane.b32.xlu0 %v6816_v5, %s6676_s16 }
  0x62   :  { %2402 = vrot.lane.b32.xlu1 %v6823_v6, %s6677_s17 }
  0x64   :  { %2400 = vrot.lane.b32.xlu0 %v6829_v7, %s6677_s17 }
  0x66   :  { %2404 = vrot.lane.b32.xlu1 %v6835_v8, %s6677_s17 }
  0x68   :  { %2398 = vrot.lane.b32.xlu0 %v6816_v5, %s6677_s17 }
  0x6a   :  { %2567 = vrot.lane.b32.xlu1 %v6823_v6, %s6678_s18 }
  0x6c   :  { %2565 = vrot.lane.b32.xlu0 %v6829_v7, %s6678_s18 }
  0x6e   :  { %2569 = vrot.lane.b32.xlu1 %v6835_v8, %s6678_s18 }
  0x70   :  { %2563 = vrot.lane.b32.xlu0 %v6816_v5, %s6678_s18 }
  0x72   :  { %2732 = vrot.lane.b32.xlu1 %v6823_v6, %s6679_s19 }
  0x74   :  { %v44_v9 = vpop.permute.xlu1 %43  ;;  %2730 = vrot.lane.b32.xlu0 %v6829_v7, %s6679_s19 }
  0x76   :  { %v46_v10 = vpop.permute.xlu0 %45  ;;  %2734 = vrot.lane.b32.xlu1 %v6835_v8, %s6679_s19 }
  0x77   :  { %v52_v16 = vsel %vm51_vm1, %v44_v9, %v46_v10 }
  0x78   :  { %v50_v11 = vpop.permute.xlu1 %49  ;;  %2728 = vrot.lane.b32.xlu0 %v6816_v5, %s6679_s19 }
  0x79   :  { %6182 = vmatprep.subr.msk.mxu1 %vm59_vm0, %v50_v11 }
  0x7a   :  { %v48_v12 = vpop.permute.xlu0 %47  ;;  %2897 = vrot.lane.b32.xlu1 %v6823_v6, %s6680_s20 }
  0x7b   :  { %v53_v14 = vsel %vm51_vm1, %v46_v10, %v48_v12  ;;  %v54_v15 = vsel %vm51_vm1, %v48_v12, %v50_v11  ;;  %v7039_v11 = vld [vmem:[%s7800_s1 + $0x1c] sm:$0xf] }
  0x7c   :  { %6179 = vmatprep.subr.msk.mxu0 %vm59_vm0, %v53_v14  ;;  %6183 = vmatpush1.msk.msra.mxu1 %vm59_vm0, %v54_v15  ;;  %v370_v17 = vpop.permute.xlu1 %369 }
  0x7d   :  { %6180 = vmatpush1.msk.msra.mxu0 %vm59_vm0, %v52_v16  ;;  %6184 = vmatmul.mubr.msk.f32.vlgmr.msra.gmra.mrb[0].mxu1 %vm55_vm2, %v6895_v13 }
  0x7e   :  { %6181 = vmatmul.mubr.msk.f32.vlgmr.msra.gmra.mrb[0].mxu0 %vm55_vm2, %v6895_v13  ;;  %v368_v18 = vpop.permute.xlu0 %367  ;;  %6185 = vmatprep.subr.msk.mxu0 %vm59_vm0, %v6749_v3 }
  0x7f   :  { %2895 = vrot.lane.b32.xlu0 %v6829_v7, %s6680_s20  ;;  %6186 = vmatpush1.msk.msra.mxu0 %vm59_vm0, %v6736_v0  ;;  %v375_v19 = vsel %vm373_vm3, %v368_v18, %v370_v17 }
  0x80   :  { %6188 = vmatprep.subr.msk.mxu1 %vm59_vm0, %v6753_v4  ;;  %356 = vmatprep.mubr.f32.mxu1 %v6672_v2  ;;  %v372_v20 = vpop.permute.xlu1 %371 }
  0x81   :  { %6189 = vmatpush1.msk.msra.mxu1 %vm59_vm0, %v6741_v1  ;;  %285 = vmatprep.mubr.f32.mxu0 %v6672_v2  ;;  %v376_v23 = vsel %vm373_vm3, %v370_v17, %v372_v20 }
  0x82   :  { %v366_v21 = vpop.permute.xlu0 %365  ;;  %6192 = vmatprep.subr.msk.mxu0 %vm59_vm0, %v375_v19  ;;  %6195 = vmatprep.subr.msk.mxu1 %vm59_vm0, %v372_v20  ;;  %v7057_v20 = vld [vmem:[%s7800_s1 + $0x20] sm:$0xf] }
  0x83   :  { %2893 = vrot.lane.b32.xlu0 %v6816_v5, %s6680_s20  ;;  %2899 = vrot.lane.b32.xlu1 %v6835_v8, %s6680_s20  ;;  %v374_v24 = vsel %vm373_vm3, %v366_v21, %v368_v18 }
  0x84   :  { %v541_v25 = vpop.permute.xlu1 %540 }
  0x85   :  { %6190 = vmatmul.mubr.msk.f32.vlgmr.msra.gmra.mrb[0].mxu1 %vm55_vm2, %v6925_v22 }
  0x86   :  { %6187 = vmatmul.mubr.msk.f32.vlgmr.msra.gmra.mrb[0].mxu0 %vm55_vm2, %v6925_v22  ;;  %v539_v26 = vpop.permute.xlu0 %538  ;;  %6196 = vmatpush1.msk.msra.mxu1 %vm59_vm0, %v376_v23 }
  0x87   :  { %6193 = vmatpush1.msk.msra.mxu0 %vm59_vm0, %v374_v24  ;;  %523 = vmatprep.mubr.f32.mxu1 %v6672_v2  ;;  %v546_v27 = vsel %vm544_vm4, %v539_v26, %v541_v25 }
  0x88   :  { %452 = vmatprep.mubr.f32.mxu0 %v6672_v2  ;;  %6199 = vmatprep.subr.msk.mxu0 %vm59_vm0, %v546_v27  ;;  %v543_v28 = vpop.permute.xlu1 %542 }
  0x89   :  { %6202 = vmatprep.subr.msk.mxu1 %vm59_vm0, %v543_v28  ;;  %v547_v31 = vsel %vm544_vm4, %v541_v25, %v543_v28 }
  0x8a   :  { %v537_v29 = vpop.permute.xlu0 %536 }
  0x8b   :  { %v545_v32 = vsel %vm544_vm4, %v537_v29, %v539_v26 }
  0x8c   :  { %v712_v33 = vpop.permute.xlu1 %711 }
  0x8d   :  { %6197 = vmatmul.mubr.msk.f32.vlgmr.msra.gmra.mrb[0].mxu1 %vm55_vm2, %v6949_v30 }
  0x8e   :  { %6194 = vmatmul.mubr.msk.f32.vlgmr.msra.gmra.mrb[0].mxu0 %vm55_vm2, %v6949_v30  ;;  %v710_v34 = vpop.permute.xlu0 %709  ;;  %6203 = vmatpush1.msk.msra.mxu1 %vm59_vm0, %v547_v31 }
  0x8f   :  { %6200 = vmatpush1.msk.msra.mxu0 %vm59_vm0, %v545_v32  ;;  %694 = vmatprep.mubr.f32.mxu1 %v6672_v2  ;;  %v717_v35 = vsel %vm715_vm5, %v710_v34, %v712_v33 }
  0x90   :  { %623 = vmatprep.mubr.f32.mxu0 %v6672_v2  ;;  %6206 = vmatprep.subr.msk.mxu0 %vm59_vm0, %v717_v35  ;;  %v714_v36 = vpop.permute.xlu1 %713 }
  0x91   :  { %6209 = vmatprep.subr.msk.mxu1 %vm59_vm0, %v714_v36  ;;  %v718_v39 = vsel %vm715_vm5, %v712_v33, %v714_v36 }
  0x92   :  { %v708_v37 = vpop.permute.xlu0 %707 }
  0x93   :  { %v716_v40 = vsel %vm715_vm5, %v708_v37, %v710_v34 }
  0x94   :  { %v883_v41 = vpop.permute.xlu1 %882 }
  0x95   :  { %6204 = vmatmul.mubr.msk.f32.vlgmr.msra.gmra.mrb[0].mxu1 %vm55_vm2, %v6967_v38 }
  0x96   :  { %6201 = vmatmul.mubr.msk.f32.vlgmr.msra.gmra.mrb[0].mxu0 %vm55_vm2, %v6967_v38  ;;  %v881_v42 = vpop.permute.xlu0 %880  ;;  %6210 = vmatpush1.msk.msra.mxu1 %vm59_vm0, %v718_v39 }
  0x97   :  { %6207 = vmatpush1.msk.msra.mxu0 %vm59_vm0, %v716_v40  ;;  %865 = vmatprep.mubr.f32.mxu1 %v6672_v2  ;;  %v888_v43 = vsel %vm886_vm6, %v881_v42, %v883_v41 }
  0x98   :  { %794 = vmatprep.mubr.f32.mxu0 %v6672_v2  ;;  %6213 = vmatprep.subr.msk.mxu0 %vm59_vm0, %v888_v43  ;;  %v885_v44 = vpop.permute.xlu1 %884 }
  0x99   :  { %6216 = vmatprep.subr.msk.mxu1 %vm59_vm0, %v885_v44  ;;  %v889_v47 = vsel %vm886_vm6, %v883_v41, %v885_v44 }
  0x9a   :  { %v879_v45 = vpop.permute.xlu0 %878 }
  0x9b   :  { %v887_v48 = vsel %vm886_vm6, %v879_v45, %v881_v42 }
  0x9c   :  { %v1054_v49 = vpop.permute.xlu1 %1053 }
  0x9d   :  { %6211 = vmatmul.mubr.msk.f32.vlgmr.msra.gmra.mrb[0].mxu1 %vm55_vm2, %v6985_v46 }
  0x9e   :  { %6208 = vmatmul.mubr.msk.f32.vlgmr.msra.gmra.mrb[0].mxu0 %vm55_vm2, %v6985_v46  ;;  %v1052_v50 = vpop.permute.xlu0 %1051  ;;  %6217 = vmatpush1.msk.msra.mxu1 %vm59_vm0, %v889_v47 }
  0x9f   :  { %6214 = vmatpush1.msk.msra.mxu0 %vm59_vm0, %v887_v48  ;;  %1036 = vmatprep.mubr.f32.mxu1 %v6672_v2  ;;  %v1059_v51 = vsel %vm1057_vm7, %v1052_v50, %v1054_v49 }
  0xa0   :  { %965 = vmatprep.mubr.f32.mxu0 %v6672_v2  ;;  %6220 = vmatprep.subr.msk.mxu0 %vm59_vm0, %v1059_v51  ;;  %v1056_v52 = vpop.permute.xlu1 %1055 }
  0xa1   :  { %6223 = vmatprep.subr.msk.mxu1 %vm59_vm0, %v1056_v52  ;;  %v1060_v55 = vsel %vm1057_vm7, %v1054_v49, %v1056_v52 }
  0xa2   :  { %v1050_v53 = vpop.permute.xlu0 %1049 }
  0xa3   :  { %v1058_v56 = vsel %vm1057_vm7, %v1050_v53, %v1052_v50 }
  0xa4   :  { %v1225_v57 = vpop.permute.xlu1 %1224 }
  0xa5   :  { %6218 = vmatmul.mubr.msk.f32.vlgmr.msra.gmra.mrb[0].mxu1 %vm55_vm2, %v7003_v54 }
  0xa6   :  { %6215 = vmatmul.mubr.msk.f32.vlgmr.msra.gmra.mrb[0].mxu0 %vm55_vm2, %v7003_v54  ;;  %v1223_v58 = vpop.permute.xlu0 %1222  ;;  %6224 = vmatpush1.msk.msra.mxu1 %vm59_vm0, %v1060_v55 }
  0xa7   :  { %6221 = vmatpush1.msk.msra.mxu0 %vm59_vm0, %v1058_v56  ;;  %1207 = vmatprep.mubr.f32.mxu1 %v6672_v2  ;;  %v1230_v59 = vsel %vm1228_vm8, %v1223_v58, %v1225_v57 }
  0xa8   :  { %1136 = vmatprep.mubr.f32.mxu0 %v6672_v2  ;;  %6227 = vmatprep.subr.msk.mxu0 %vm59_vm0, %v1230_v59  ;;  %v1227_v60 = vpop.permute.xlu1 %1226 }
  0xa9   :  { %6230 = vmatprep.subr.msk.mxu1 %vm59_vm0, %v1227_v60  ;;  %v1231_v63 = vsel %vm1228_vm8, %v1225_v57, %v1227_v60 }
  0xaa   :  { %v1221_v61 = vpop.permute.xlu0 %1220 }
  0xab   :  { %v1229_v0 = vsel %vm1228_vm8, %v1221_v61, %v1223_v58 }
  0xac   :  { %v1396_v1 = vpop.permute.xlu1 %1395 }
  0xad   :  { %6225 = vmatmul.mubr.msk.f32.vlgmr.msra.gmra.mrb[0].mxu1 %vm55_vm2, %v7021_v62 }
  0xae   :  { %6222 = vmatmul.mubr.msk.f32.vlgmr.msra.gmra.mrb[0].mxu0 %vm55_vm2, %v7021_v62  ;;  %v1394_v3 = vpop.permute.xlu0 %1393  ;;  %6231 = vmatpush1.msk.msra.mxu1 %vm59_vm0, %v1231_v63 }
  0xaf   :  { %6228 = vmatpush1.msk.msra.mxu0 %vm59_vm0, %v1229_v0  ;;  %1378 = vmatprep.mubr.f32.mxu1 %v6672_v2  ;;  %v1401_v4 = vsel %vm1399_vm9, %v1394_v3, %v1396_v1 }
  0xb0   :  { %1307 = vmatprep.mubr.f32.mxu0 %v6672_v2  ;;  %6234 = vmatprep.subr.msk.mxu0 %vm59_vm0, %v1401_v4  ;;  %v1398_v9 = vpop.permute.xlu1 %1397  ;;  %v1561_v4 = vlaneseq }
  0xb1   :  { %6237 = vmatprep.subr.msk.mxu1 %vm59_vm0, %v1398_v9  ;;  %v1402_v12 = vsel %vm1399_vm9, %v1396_v1, %v1398_v9 }
  0xb2   :  { %v1392_v10 = vpop.permute.xlu0 %1391  ;;  %v7180_v9 = vshrl.u32 %v1561_v4, 7  ;;  %v6681_v4 = vmov 0  }
  0xb3   :  { %v1400_v14 = vsel %vm1399_vm9, %v1392_v10, %v1394_v3  ;;  %6662 = vset.pattern.permute.xlu1 %v6681_v4  ;;  %6663 = vset.pattern.permute.xlu0 %v6681_v4  ;;  %v7442_v4 = vld [vmem:[%s7804_s2 + $0x8] sm:$0xff] }
  0xb4   :  { %v1597_v15 = vpop.permute.xlu1 %1596  ;;  %v1571_v10 = vsub.s32 2, %v7180_v9 }
  0xb5   :  { %6232 = vmatmul.mubr.msk.f32.vlgmr.msra.gmra.mrb[0].mxu1 %vm55_vm2, %v7039_v11 }
  0xb6   :  { %6229 = vmatmul.mubr.msk.f32.vlgmr.msra.gmra.mrb[0].mxu0 %vm55_vm2, %v7039_v11  ;;  %v1595_v16 = vpop.permute.xlu0 %1594  ;;  %6238 = vmatpush1.msk.msra.mxu1 %vm59_vm0, %v1402_v12  ;;  %v1563_v12 = vsub.s32 0, %v7180_v9 }
  0xb7   :  { %6235 = vmatpush1.msk.msra.mxu0 %vm59_vm0, %v1400_v14  ;;  %1549 = vmatprep.mubr.f32.mxu1 %v6672_v2  ;;  %v1601_v17 = vsel %vm51_vm1, %v1595_v16, %v1597_v15  ;;  %v1567_v14 = vsub.s32 1, %v7180_v9 }
  0xb8   :  { %1478 = vmatprep.mubr.f32.mxu0 %v6672_v2  ;;  %6242 = vmatprep.subr.msk.mxu0 %vm59_vm0, %v1601_v17  ;;  %v1599_v18 = vpop.permute.xlu1 %1598 }
  0xb9   :  { %6245 = vmatprep.subr.msk.mxu1 %vm59_vm0, %v1599_v18  ;;  %v1602_v21 = vsel %vm51_vm1, %v1597_v15, %v1599_v18 }
  0xba   :  { %v1593_v19 = vpop.permute.xlu0 %1592 }
  0xbb   :  { %v1600_v23 = vsel %vm51_vm1, %v1593_v19, %v1595_v16  ;;  %v1575_v16 = vsub.s32 3, %v7180_v9 }
  0xbc   :  { %v1908_v24 = vpop.permute.xlu1 %1907 }
  0xbd   :  { %6239 = vmatmul.mubr.msk.f32.vlgmr.msra.gmra.mrb[0].mxu1 %vm55_vm2, %v7057_v20 }
  0xbe   :  { %6236 = vmatmul.mubr.msk.f32.vlgmr.msra.gmra.mrb[0].mxu0 %vm55_vm2, %v7057_v20  ;;  %6246 = vmatpush1.msk.msra.mxu1 %vm59_vm0, %v1602_v21  ;;  %v1906_v25 = vpop.permute.xlu0 %1905 }
  0xbf   :  { %6243 = vmatpush1.msk.msra.mxu0 %vm59_vm0, %v1600_v23  ;;  %1746 = vmatprep.mubr.f32.mxu1 %v6672_v2  ;;  %v1912_v27 = vsel %vm373_vm3, %v1906_v25, %v1908_v24 }
  0xc0   :  { %1675 = vmatprep.mubr.f32.mxu0 %v6672_v2  ;;  %6248 = vmatprep.subr.msk.mxu0 %vm59_vm0, %v6829_v7  ;;  %v1910_v26 = vpop.permute.xlu1 %1909 }
  0xc1   :  { %6247 = vmatmul.mubr.msk.f32.vlgmr.msra.gmra.mrb[2].mxu1 %vm55_vm2, %v6895_v13  ;;  %6251 = vmatprep.subr.msk.mxu1 %vm59_vm0, %v6835_v8  ;;  %v1913_v29 = vsel %vm373_vm3, %v1908_v24, %v1910_v26 }
  0xc2   :  { %6244 = vmatmul.mubr.msk.f32.vlgmr.msra.gmra.mrb[2].mxu0 %vm55_vm2, %v6895_v13  ;;  %v1904_v28 = vpop.permute.xlu0 %1903  ;;  %6252 = vmatpush1.msk.msra.mxu1 %vm59_vm0, %v6823_v6 }
  0xc3   :  { %6249 = vmatpush1.msk.msra.mxu0 %vm59_vm0, %v6816_v5  ;;  %1896 = vmatprep.mubr.f32.mxu1 %v6672_v2  ;;  %v1911_v13 = vsel %vm373_vm3, %v1904_v28, %v1906_v25 }
  0xc4   :  { %1825 = vmatprep.mubr.f32.mxu0 %v6672_v2  ;;  %6254 = vmatprep.subr.msk.mxu0 %vm59_vm0, %v1912_v27  ;;  %v2073_v7 = vpop.permute.xlu1 %2072 }
  0xc5   :  { %6257 = vmatprep.subr.msk.mxu1 %vm59_vm0, %v1910_v26 }
  0xc6   :  { %v2071_v8 = vpop.permute.xlu0 %2070 }
  0xc7   :  { %v2077_v5 = vsel %vm544_vm4, %v2071_v8, %v2073_v7 }
  0xc8   :  { %v2075_v31 = vpop.permute.xlu1 %2074 }
  0xc9   :  { %6253 = vmatmul.mubr.msk.f32.vlgmr.msra.gmra.mrb[2].mxu1 %vm55_vm2, %v6925_v22  ;;  %v2078_v34 = vsel %vm544_vm4, %v2073_v7, %v2075_v31 }
  0xca   :  { %6250 = vmatmul.mubr.msk.f32.vlgmr.msra.gmra.mrb[2].mxu0 %vm55_vm2, %v6925_v22  ;;  %6258 = vmatpush1.msk.msra.mxu1 %vm59_vm0, %v1913_v29  ;;  %v2069_v6 = vpop.permute.xlu0 %2068 }
  0xcb   :  { %6255 = vmatpush1.msk.msra.mxu0 %vm59_vm0, %v1911_v13  ;;  %2057 = vmatprep.mubr.f32.mxu1 %v6672_v2  ;;  %v2076_v35 = vsel %vm544_vm4, %v2069_v6, %v2071_v8 }
  0xcc   :  { %1986 = vmatprep.mubr.f32.mxu0 %v6672_v2  ;;  %6260 = vmatprep.subr.msk.mxu0 %vm59_vm0, %v2077_v5  ;;  %v2238_v32 = vpop.permute.xlu1 %2237 }
  0xcd   :  { %6263 = vmatprep.subr.msk.mxu1 %vm59_vm0, %v2075_v31 }
  0xce   :  { %v2236_v33 = vpop.permute.xlu0 %2235 }
  0xcf   :  { %v2242_v36 = vsel %vm715_vm5, %v2236_v33, %v2238_v32 }
  0xd0   :  { %v2240_v22 = vpop.permute.xlu1 %2239 }
  0xd1   :  { %6259 = vmatmul.mubr.msk.f32.vlgmr.msra.gmra.mrb[2].mxu1 %vm55_vm2, %v6949_v30  ;;  %v2243_v41 = vsel %vm715_vm5, %v2238_v32, %v2240_v22 }
  0xd2   :  { %6256 = vmatmul.mubr.msk.f32.vlgmr.msra.gmra.mrb[2].mxu0 %vm55_vm2, %v6949_v30  ;;  %6264 = vmatpush1.msk.msra.mxu1 %vm59_vm0, %v2078_v34  ;;  %v2234_v37 = vpop.permute.xlu0 %2233 }
  0xd3   :  { %6261 = vmatpush1.msk.msra.mxu0 %vm59_vm0, %v2076_v35  ;;  %2222 = vmatprep.mubr.f32.mxu1 %v6672_v2  ;;  %v2241_v42 = vsel %vm715_vm5, %v2234_v37, %v2236_v33 }
  0xd4   :  { %2151 = vmatprep.mubr.f32.mxu0 %v6672_v2  ;;  %6266 = vmatprep.subr.msk.mxu0 %vm59_vm0, %v2242_v36  ;;  %v2403_v39 = vpop.permute.xlu1 %2402 }
  0xd5   :  { %6269 = vmatprep.subr.msk.mxu1 %vm59_vm0, %v2240_v22 }
  0xd6   :  { %v2401_v40 = vpop.permute.xlu0 %2400 }
  0xd7   :  { %v2407_v43 = vsel %vm886_vm6, %v2401_v40, %v2403_v39 }
  0xd8   :  { %v2405_v30 = vpop.permute.xlu1 %2404 }
  0xd9   :  { %6265 = vmatmul.mubr.msk.f32.vlgmr.msra.gmra.mrb[2].mxu1 %vm55_vm2, %v6967_v38  ;;  %v2408_v48 = vsel %vm886_vm6, %v2403_v39, %v2405_v30 }
  0xda   :  { %6262 = vmatmul.mubr.msk.f32.vlgmr.msra.gmra.mrb[2].mxu0 %vm55_vm2, %v6967_v38  ;;  %6270 = vmatpush1.msk.msra.mxu1 %vm59_vm0, %v2243_v41  ;;  %v2399_v44 = vpop.permute.xlu0 %2398 }
  0xdb   :  { %6267 = vmatpush1.msk.msra.mxu0 %vm59_vm0, %v2241_v42  ;;  %2387 = vmatprep.mubr.f32.mxu1 %v6672_v2  ;;  %v2406_v49 = vsel %vm886_vm6, %v2399_v44, %v2401_v40 }
  0xdc   :  { %2316 = vmatprep.mubr.f32.mxu0 %v6672_v2  ;;  %6272 = vmatprep.subr.msk.mxu0 %vm59_vm0, %v2407_v43  ;;  %v2568_v45 = vpop.permute.xlu1 %2567 }
  0xdd   :  { %6275 = vmatprep.subr.msk.mxu1 %vm59_vm0, %v2405_v30 }
  0xde   :  { %v2566_v47 = vpop.permute.xlu0 %2565 }
  0xdf   :  { %v2572_v50 = vsel %vm1057_vm7, %v2566_v47, %v2568_v45 }
  0xe0   :  { %v2570_v38 = vpop.permute.xlu1 %2569 }
  0xe1   :  { %6271 = vmatmul.mubr.msk.f32.vlgmr.msra.gmra.mrb[2].mxu1 %vm55_vm2, %v6985_v46  ;;  %v2573_v55 = vsel %vm1057_vm7, %v2568_v45, %v2570_v38 }
  0xe2   :  { %6268 = vmatmul.mubr.msk.f32.vlgmr.msra.gmra.mrb[2].mxu0 %vm55_vm2, %v6985_v46  ;;  %6276 = vmatpush1.msk.msra.mxu1 %vm59_vm0, %v2408_v48  ;;  %v2564_v51 = vpop.permute.xlu0 %2563 }
  0xe3   :  { %6273 = vmatpush1.msk.msra.mxu0 %vm59_vm0, %v2406_v49  ;;  %2552 = vmatprep.mubr.f32.mxu1 %v6672_v2  ;;  %v2571_v56 = vsel %vm1057_vm7, %v2564_v51, %v2566_v47 }
  0xe4   :  { %2481 = vmatprep.mubr.f32.mxu0 %v6672_v2  ;;  %6278 = vmatprep.subr.msk.mxu0 %vm59_vm0, %v2572_v50  ;;  %v2733_v52 = vpop.permute.xlu1 %2732 }
  0xe5   :  { %6281 = vmatprep.subr.msk.mxu1 %vm59_vm0, %v2570_v38 }
  0xe6   :  { %v2731_v53 = vpop.permute.xlu0 %2730 }
  0xe7   :  { %v2737_v46 = vsel %vm1228_vm8, %v2731_v53, %v2733_v52 }
  0xe8   :  { %v2735_v57 = vpop.permute.xlu1 %2734 }
  0xe9   :  { %6277 = vmatmul.mubr.msk.f32.vlgmr.msra.gmra.mrb[2].mxu1 %vm55_vm2, %v7003_v54  ;;  %v2738_v59 = vsel %vm1228_vm8, %v2733_v52, %v2735_v57 }
  0xea   :  { %6274 = vmatmul.mubr.msk.f32.vlgmr.msra.gmra.mrb[2].mxu0 %vm55_vm2, %v7003_v54  ;;  %6282 = vmatpush1.msk.msra.mxu1 %vm59_vm0, %v2573_v55  ;;  %v2729_v58 = vpop.permute.xlu0 %2728 }
  0xeb   :  { %6279 = vmatpush1.msk.msra.mxu0 %vm59_vm0, %v2571_v56  ;;  %2717 = vmatprep.mubr.f32.mxu1 %v6672_v2  ;;  %v2736_v61 = vsel %vm1228_vm8, %v2729_v58, %v2731_v53 }
  0xec   :  { %2646 = vmatprep.mubr.f32.mxu0 %v6672_v2  ;;  %6284 = vmatprep.subr.msk.mxu0 %vm59_vm0, %v2737_v46  ;;  %v2898_v60 = vpop.permute.xlu1 %2897 }
  0xed   :  { %6287 = vmatprep.subr.msk.mxu1 %vm59_vm0, %v2735_v57 }
  0xf1   :  { %6283 = vmatmul.mubr.msk.f32.vlgmr.msra.gmra.mrb[2].mxu1 %vm55_vm2, %v7021_v62  ;;  %v2896_v54 = vpop.permute.xlu0 %2895 }
  0xf2   :  { %6280 = vmatmul.mubr.msk.f32.vlgmr.msra.gmra.mrb[2].mxu0 %vm55_vm2, %v7021_v62  ;;  %6288 = vmatpush1.msk.msra.mxu1 %vm59_vm0, %v2738_v59  ;;  %v2902_v63 = vsel %vm1399_vm9, %v2896_v54, %v2898_v60 }
  0xf3   :  { %6285 = vmatpush1.msk.msra.mxu0 %vm59_vm0, %v2736_v61  ;;  %2882 = vmatprep.mubr.f32.mxu1 %v6672_v2 }
  0xf4   :  { %2811 = vmatprep.mubr.f32.mxu0 %v6672_v2  ;;  %6290 = vmatprep.subr.msk.mxu0 %vm59_vm0, %v2902_v63 }
  0xf5   :  { %v2894_v0 = vpop.permute.xlu0 %2893  ;;  %v2900_v1 = vpop.permute.xlu1 %2899 }
  0xf6   :  { %6293 = vmatprep.subr.msk.mxu1 %vm59_vm0, %v2900_v1  ;;  %v2903_v3 = vsel %vm1399_vm9, %v2898_v60, %v2900_v1  ;;  %v2901_v62 = vsel %vm1399_vm9, %v2894_v0, %v2896_v54 }
  0xf9   :  { %6289 = vmatmul.mubr.msk.f32.vlgmr.msra.gmra.mrb[2].mxu1 %vm55_vm2, %v7039_v11 }
  0xfa   :  { %6286 = vmatmul.mubr.msk.f32.vlgmr.msra.gmra.mrb[2].mxu0 %vm55_vm2, %v7039_v11  ;;  %6294 = vmatpush1.msk.msra.mxu1 %vm59_vm0, %v2903_v3  ;;  %v32_v11 = vld [vmem:[%s7801_s7] sm:$0xf] }
  0xfb   :  { %6291 = vmatpush1.msk.msra.mxu0 %vm59_vm0, %v2901_v62  ;;  %3047 = vmatprep.mubr.f32.mxu1 %v6672_v2  ;;  %v7190_v15 = vrot.slane %v32_v11, %v1571_v10  ;;  %v7195_v17 = vrot.slane %v32_v11, %v1563_v12  ;;  %v7199_v18 = vrot.slane %v32_v11, %v1567_v14 }
  0xfc   :  { %2976 = vmatprep.mubr.f32.mxu0 %v6672_v2  ;;  %6433 = vmatprep.subr.mxu1 %v6672_v2  ;;  %v7204_v24 = vrot.slane %v32_v11, %v1575_v16 }
 0x101   :  { %6295 = vmatmul.mubr.msk.f32.vlgmr.msra.gmra.mrb[2].mxu1 %vm55_vm2, %v7057_v20 }
 0x102   :  { %6292 = vmatmul.mubr.msk.f32.vlgmr.msra.gmra.mrb[2].mxu0 %vm55_vm2, %v7057_v20  ;;  %6435 = vmatprep.mubr.msk.f32.mxu1 %vm6682_vm11, %v6672_v2 }
 0x103   :  { %3255 = vmatprep.mubr.f32.mxu0 %v6672_v2 }
 0x190   :  { %v1551_v19 = vpop.f32.mrb[0].mxu1 }
 0x191   :  { %v7202_v20 = vmul.f32 %v7190_v15, %v1551_v19  ;;  %v1480_v21 = vpop.f32.mrb[0].mxu0  ;;  %v1553_v23 = vpop.f32.mrb[1].mxu1 }
 0x192   :  { %v7207_v25 = vmul.f32 %v7195_v17, %v1480_v21  ;;  %v1482_v26 = vpop.f32.mrb[1].mxu0  ;;  %v7219_v29 = vmul.f32 %v7204_v24, %v1553_v23 }
 0x193   :  { %v7210_v27 = vmul.f32 %v7199_v18, %v1482_v26  ;;  %v3075_v8 = vmul.f32 %v7202_v20, %v7202_v20  ;;  %v3065_v32 = vsel %vm59_vm0, %v7202_v20, 0.0 }
 0x194   :  { %v3062_v28 = vsel %vm59_vm0, %v7207_v25, 0.0  ;;  %v3073_v7 = vmul.f32 %v7207_v25, %v7207_v25  ;;  %v3068_v22 = vsel %vm3067_vm10, %v7219_v29, 0.0  ;;  %v3076_v36 = vmul.f32 %v7219_v29, %v7219_v29 }
 0x195   :  { %v3063_v13 = vsel %vm59_vm0, %v7210_v27, 0.0  ;;  %v3074_v31 = vmul.f32 %v7210_v27, %v7210_v27  ;;  %v3080_v37 = vsel %vm59_vm0, %v3075_v8, 0.0 }
 0x196   :  { %v3064_v5 = vadd.f32 %v3063_v13, %v3062_v28  ;;  %v3077_v6 = vsel %vm59_vm0, %v3073_v7, 0.0  ;;  %v3082_v41 = vsel %vm3067_vm10, %v3076_v36, 0.0 }
 0x197   :  { %v3078_v33 = vsel %vm59_vm0, %v3074_v31, 0.0 }
 0x198   :  { %v3066_v34 = vadd.f32 %v3065_v32, %v3064_v5  ;;  %v3079_v35 = vadd.f32 %v3078_v33, %v3077_v6  ;;  %v3115_v5 = vld [vmem:[%s7802_s3] sm:$0xf] }
 0x199   :  { %v3119_v33 = vld [vmem:[%s7803_s4] sm:$0xf] }
 0x19a   :  { %v3069_v39 = vadd.f32 %v3068_v22, %v3066_v34  ;;  %v3081_v40 = vadd.f32 %v3080_v37, %v3079_v35 }
 0x19c   :  { %3070 = vadd.xlane.f32.xlu0 %v3069_v39  ;;  %v3083_v42 = vadd.f32 %v3082_v41, %v3081_v40 }
 0x1a0   :  { %3084 = vadd.xlane.f32.xlu0 %v3083_v42 }
 0x1d4   :  { %v3049_v30 = vpop.f32.mrb[2].mxu1 }
 0x1d5   :  { %v7236_v43 = vmul.f32 %v3049_v30, %v7190_v15  ;;  %v2978_v44 = vpop.f32.mrb[2].mxu0  ;;  %v3051_v45 = vpop.f32.mrb[3].mxu1 }
 0x1d6   :  { %v7239_v47 = vmul.f32 %v2978_v44, %v7195_v17  ;;  %v2980_v48 = vpop.f32.mrb[3].mxu0  ;;  %v7242_v49 = vmul.f32 %v3051_v45, %v7204_v24 }
 0x1d7   :  { %v7245_v38 = vmul.f32 %v2980_v48, %v7199_v18  ;;  %v3099_v52 = vmul.f32 %v7236_v43, %v7236_v43  ;;  %v3090_v57 = vsel %vm59_vm0, %v7236_v43, 0.0 }
 0x1d8   :  { %v3087_v50 = vsel %vm59_vm0, %v7239_v47, 0.0  ;;  %v3097_v51 = vmul.f32 %v7239_v47, %v7239_v47  ;;  %v3100_v58 = vmul.f32 %v7242_v49, %v7242_v49  ;;  %v3092_v54 = vsel %vm3067_vm10, %v7242_v49, 0.0 }
 0x1d9   :  { %v3088_v53 = vsel %vm59_vm0, %v7245_v38, 0.0  ;;  %v3098_v55 = vmul.f32 %v7245_v38, %v7245_v38  ;;  %v3104_v63 = vsel %vm59_vm0, %v3099_v52, 0.0 }
 0x1da   :  { %v3089_v56 = vadd.f32 %v3088_v53, %v3087_v50  ;;  %v3101_v46 = vsel %vm59_vm0, %v3097_v51, 0.0  ;;  %v3106_v3 = vsel %vm3067_vm10, %v3100_v58, 0.0 }
 0x1db   :  { %v3102_v59 = vsel %vm59_vm0, %v3098_v55, 0.0 }
 0x1dc   :  { %v3091_v60 = vadd.f32 %v3090_v57, %v3089_v56  ;;  %v3103_v61 = vadd.f32 %v3102_v59, %v3101_v46 }
 0x1de   :  { %v3093_v0 = vadd.f32 %v3092_v54, %v3091_v60  ;;  %v3105_v1 = vadd.f32 %v3104_v63, %v3103_v61 }
 0x1e0   :  { %3094 = vadd.xlane.f32.xlu1 %v3093_v0  ;;  %v3107_v62 = vadd.f32 %v3106_v3, %v3105_v1 }
 0x1e2   :  { %3108 = vadd.xlane.f32.xlu0 %v3107_v62 }
 0x229   :  { %v3071_v11 = vpop.xlane.xlu0 %3070 }
 0x22d   :  { %v3085_v16 = vpop.xlane.xlu0 %3084 }
 0x26d   :  { %v3095_v19 = vpop.xlane.xlu1 %3094 }
 0x26e   :  { %v3096_v21 = vadd.f32 %v3095_v19, %v3071_v11 }
 0x26f   :  { %v3109_v23 = vpop.xlane.xlu0 %3108 }
 0x270   :  { %v3111_v26 = vmul.f32 0.001953125, %v3096_v21  ;;  %v3110_v28 = vadd.f32 %v3109_v23, %v3085_v16 }
 0x272   :  { %v3113_v7 = vmul.f32 %v3111_v26, %v3111_v26  ;;  %v3112_v8 = vmul.f32 0.001953125, %v3110_v28  ;;  %v7469_v28 = vld [vmem:[%s7804_s2] sm:$0xff] }
 0x274   :  { %v3114_v13 = vsub.f32 %v3112_v8, %v3113_v7 }
 0x276   :  { %v3116_v31 = vadd.f32 1e-05, %v3114_v13 }
 0x278   :  { %6668 = vrsqrt.f32 %v3116_v31 }
 0x282   :  { %v6669_v6 = vpop.eup %6668 }
 0x283   :  { %v3118_v32 = vmul.f32 %v6669_v6, %v3115_v5  ;;  %v7490_v6 = vld [vmem:[%s7804_s2 + $0x10] sm:$0xff] }
 0x285   :  { %3124 = vperm.xlu1 %6662, %v3118_v32   ;;  %v3120_v34 = vmul.f32 %v3118_v32, %v3111_v26 }
 0x287   :  { %v3121_v35 = vsub.f32 %v3119_v33, %v3120_v34 }
 0x289   :  { %3133 = vperm.xlu0 %6663, %v3121_v35  }
 0x304   :  { %v7273_v22 = vpop.permute.xlu1 %3124 }
 0x305   :  { %v3127_v36 = vmul.f32 %v7273_v22, %v7207_v25  ;;  %v3128_v37 = vmul.f32 %v7273_v22, %v7210_v27  ;;  %v3129_v39 = vmul.f32 %v7273_v22, %v7202_v20  ;;  %v3130_v25 = vmul.f32 %v7273_v22, %v7219_v29 }
 0x306   :  { %v3149_v53 = vmul.f32 %v7273_v22, %v7245_v38  ;;  %v3148_v56 = vmul.f32 %v7273_v22, %v7239_v47  ;;  %v3151_v59 = vmul.f32 %v7273_v22, %v7242_v49 }
 0x308   :  { %v7281_v40 = vpop.permute.xlu0 %3133 }
 0x309   :  { %v3136_v41 = vadd.f32 %v7281_v40, %v3127_v36  ;;  %v3137_v42 = vadd.f32 %v7281_v40, %v3128_v37  ;;  %v3138_v30 = vadd.f32 %v7281_v40, %v3129_v39  ;;  %v3139_v20 = vadd.f32 %v7281_v40, %v3130_v25  ;;  %v7514_v39 = vld [vmem:[%s7804_s2 + $0x18] sm:$0xff] }
 0x30a   :  { %v3153_v55 = vadd.f32 %v3149_v53, %v7281_v40  ;;  %v3152_v46 = vadd.f32 %v3148_v56, %v7281_v40  ;;  %v3155_v60 = vadd.f32 %v3151_v59, %v7281_v40  ;;  %v7580_v59 = vld [vmem:[%s7804_s2 + $0x30] sm:$0xff] }
 0x30b   :  { %v3141_v44 = vmax.f32 %v3137_v42, 0.0  ;;  %v3140_v45 = vmax.f32 %v3136_v41, 0.0  ;;  %v3142_v48 = vmax.f32 %v3138_v30, 0.0  ;;  %v3143_v29 = vmax.f32 %v3139_v20, 0.0 }
 0x30c   :  { %v3157_v57 = vmax.f32 %v3153_v55, 0.0  ;;  %v3156_v38 = vmax.f32 %v3152_v46, 0.0  ;;  %v7559_v55 = vld [vmem:[%s7804_s2 + $0x28] sm:$0xff] }
 0x30d   :  { %v7287_v50 = vmul.f32 %v3141_v44, %v7199_v18  ;;  %v7299_v27 = vmul.f32 %v3140_v45, %v7195_v17  ;;  %v7302_v51 = vmul.f32 %v3142_v48, %v7190_v15  ;;  %v3147_v52 = vmul.f32 %v3143_v29, %v7204_v24 }
 0x30e   :  { %v7352_v58 = vmul.f32 %v3157_v57, %v7199_v18  ;;  %v7359_v47 = vmul.f32 %v3156_v38, %v7195_v17  ;;  %v3150_v17 = vmul.f32 %v7273_v22, %v7236_v43  ;;  %v3159_v43 = vmax.f32 %v3155_v60, 0.0 }
 0x30f   :  { %3652 = vrot.lane.b32.xlu0 %v7287_v50, %s6675_s15  ;;  %3173 = vrot.lane.b32.xlu1 %v7287_v50, %s6673_s13 }
 0x310   :  { %v3154_v18 = vadd.f32 %v3150_v17, %v7281_v40  ;;  %v7399_v49 = vmul.f32 %v3159_v43, %v7204_v24 }
 0x312   :  { %v3158_v61 = vmax.f32 %v3154_v18, 0.0 }
 0x313   :  { %3175 = vrot.lane.b32.xlu1 %v7302_v51, %s6673_s13  ;;  %3650 = vrot.lane.b32.xlu0 %v7299_v27, %s6675_s15 }
 0x314   :  { %v7392_v54 = vmul.f32 %v3158_v61, %v7190_v15 }
 0x317   :  { %3818 = vrot.lane.b32.xlu0 %v7287_v50, %s6676_s16  ;;  %3171 = vrot.lane.b32.xlu1 %v7299_v27, %s6673_s13 }
 0x31b   :  { %3816 = vrot.lane.b32.xlu0 %v7299_v27, %s6676_s16  ;;  %3177 = vrot.lane.b32.xlu1 %v3147_v52, %s6673_s13 }
 0x31f   :  { %3984 = vrot.lane.b32.xlu0 %v7287_v50, %s6677_s17  ;;  %3486 = vrot.lane.b32.xlu1 %v7287_v50, %s6674_s14 }
 0x323   :  { %3982 = vrot.lane.b32.xlu0 %v7299_v27, %s6677_s17  ;;  %3488 = vrot.lane.b32.xlu1 %v7302_v51, %s6674_s14 }
 0x327   :  { %4150 = vrot.lane.b32.xlu0 %v7287_v50, %s6678_s18  ;;  %3484 = vrot.lane.b32.xlu1 %v7299_v27, %s6674_s14 }
 0x32b   :  { %4148 = vrot.lane.b32.xlu0 %v7299_v27, %s6678_s18  ;;  %3490 = vrot.lane.b32.xlu1 %v3147_v52, %s6674_s14 }
 0x32f   :  { %4316 = vrot.lane.b32.xlu0 %v7287_v50, %s6679_s19  ;;  %3654 = vrot.lane.b32.xlu1 %v7302_v51, %s6675_s15 }
 0x333   :  { %4314 = vrot.lane.b32.xlu0 %v7299_v27, %s6679_s19  ;;  %3656 = vrot.lane.b32.xlu1 %v3147_v52, %s6675_s15 }
 0x337   :  { %4482 = vrot.lane.b32.xlu0 %v7287_v50, %s6680_s20  ;;  %3820 = vrot.lane.b32.xlu1 %v7302_v51, %s6676_s16 }
 0x33b   :  { %4480 = vrot.lane.b32.xlu0 %v7299_v27, %s6680_s20  ;;  %3822 = vrot.lane.b32.xlu1 %v3147_v52, %s6676_s16 }
 0x33f   :  { %3986 = vrot.lane.b32.xlu1 %v7302_v51, %s6677_s17  ;;  %4650 = vrot.lane.b32.xlu0 %v7352_v58, %s6673_s13 }
 0x343   :  { %3988 = vrot.lane.b32.xlu1 %v3147_v52, %s6677_s17  ;;  %4648 = vrot.lane.b32.xlu0 %v7359_v47, %s6673_s13 }
 0x347   :  { %4152 = vrot.lane.b32.xlu1 %v7302_v51, %s6678_s18  ;;  %4955 = vrot.lane.b32.xlu0 %v7352_v58, %s6674_s14 }
 0x34b   :  { %4154 = vrot.lane.b32.xlu1 %v3147_v52, %s6678_s18  ;;  %4953 = vrot.lane.b32.xlu0 %v7359_v47, %s6674_s14 }
 0x34f   :  { %4318 = vrot.lane.b32.xlu1 %v7302_v51, %s6679_s19  ;;  %5116 = vrot.lane.b32.xlu0 %v7352_v58, %s6675_s15 }
 0x353   :  { %4320 = vrot.lane.b32.xlu1 %v3147_v52, %s6679_s19  ;;  %5114 = vrot.lane.b32.xlu0 %v7359_v47, %s6675_s15 }
 0x357   :  { %4484 = vrot.lane.b32.xlu1 %v7302_v51, %s6680_s20  ;;  %5277 = vrot.lane.b32.xlu0 %v7352_v58, %s6676_s16 }
 0x35b   :  { %4486 = vrot.lane.b32.xlu1 %v3147_v52, %s6680_s20  ;;  %5275 = vrot.lane.b32.xlu0 %v7359_v47, %s6676_s16 }
 0x35f   :  { %4652 = vrot.lane.b32.xlu1 %v7392_v54, %s6673_s13  ;;  %5438 = vrot.lane.b32.xlu0 %v7352_v58, %s6677_s17 }
 0x363   :  { %4654 = vrot.lane.b32.xlu1 %v7399_v49, %s6673_s13  ;;  %5436 = vrot.lane.b32.xlu0 %v7359_v47, %s6677_s17 }
 0x367   :  { %4957 = vrot.lane.b32.xlu1 %v7392_v54, %s6674_s14  ;;  %5599 = vrot.lane.b32.xlu0 %v7352_v58, %s6678_s18 }
 0x36b   :  { %4959 = vrot.lane.b32.xlu1 %v7399_v49, %s6674_s14  ;;  %5597 = vrot.lane.b32.xlu0 %v7359_v47, %s6678_s18 }
 0x36f   :  { %5118 = vrot.lane.b32.xlu1 %v7392_v54, %s6675_s15  ;;  %5760 = vrot.lane.b32.xlu0 %v7352_v58, %s6679_s19 }
 0x373   :  { %5120 = vrot.lane.b32.xlu1 %v7399_v49, %s6675_s15  ;;  %5758 = vrot.lane.b32.xlu0 %v7359_v47, %s6679_s19 }
 0x377   :  { %5279 = vrot.lane.b32.xlu1 %v7392_v54, %s6676_s16  ;;  %5921 = vrot.lane.b32.xlu0 %v7352_v58, %s6680_s20 }
 0x37b   :  { %5281 = vrot.lane.b32.xlu1 %v7399_v49, %s6676_s16  ;;  %5919 = vrot.lane.b32.xlu0 %v7359_v47, %s6680_s20 }
 0x37f   :  { %5440 = vrot.lane.b32.xlu1 %v7392_v54, %s6677_s17 }
 0x381   :  { %v3653_v15 = vpop.permute.xlu0 %3652  ;;  %v3174_v24 = vpop.permute.xlu1 %3173 }
 0x383   :  { %5442 = vrot.lane.b32.xlu1 %v7399_v49, %s6677_s17 }
 0x385   :  { %v3176_v63 = vpop.permute.xlu1 %3175  ;;  %v3651_v0 = vpop.permute.xlu0 %3650 }
 0x386   :  { %v3180_v1 = vsel %vm51_vm1, %v3174_v24, %v3176_v63  ;;  %v3658_v40 = vsel %vm544_vm4, %v3651_v0, %v3653_v15  ;;  %v7603_v0 = vld [vmem:[%s7804_s2 + $0x38] sm:$0xff] }
 0x387   :  { %6297 = vmatprep.subr.msk.mxu0 %vm59_vm0, %v3180_v1  ;;  %5601 = vrot.lane.b32.xlu1 %v7392_v54, %s6678_s18 }
 0x389   :  { %v7437_v3 = vpop.permute.xlu0 %3818  ;;  %v3172_v62 = vpop.permute.xlu1 %3171 }
 0x38a   :  { %v3179_v11 = vsel %vm51_vm1, %v3172_v62, %v3174_v24 }
 0x38b   :  { %6298 = vmatpush1.msk.msra.mxu0 %vm59_vm0, %v3179_v11  ;;  %5603 = vrot.lane.b32.xlu1 %v7399_v49, %s6678_s18 }
 0x38c   :  { %6302 = vmatprep.subr.msk.mxu0 %vm59_vm0, %v7287_v50  ;;  %6299 = vmatmul.mubr.msk.f32.vlgmr.msra.gmra.mrb[4].mxu0 %vm55_vm2, %v7442_v4  ;;  %v7536_v50 = vld [vmem:[%s7804_s2 + $0x20] sm:$0xff] }
 0x38d   :  { %v3817_v16 = vpop.permute.xlu0 %3816  ;;  %6303 = vmatpush1.msk.msra.mxu0 %vm59_vm0, %v7299_v27  ;;  %v3178_v19 = vpop.permute.xlu1 %3177  ;;  %3405 = vmatprep.mubr.f32.mxu0 %v6672_v2 }
 0x38e   :  { %v3181_v21 = vsel %vm51_vm1, %v3176_v63, %v3178_v19  ;;  %v3824_v25 = vsel %vm715_vm5, %v3817_v16, %v7437_v3 }
 0x38f   :  { %6434 = vmatpush3.msk.msra.mxu1 %vm59_vm0, %v3181_v21  ;;  %5762 = vrot.lane.b32.xlu1 %v7392_v54, %s6679_s19  ;;  %v7624_v21 = vld [vmem:[%s7804_s2 + $0x40] sm:$0xff] }
 0x390   :  { %6436 = vmatmul.mubr.msk.f32.vlgmr.msra.gmra.mrb[4].mxu1 %vm55_vm2, %v7442_v4  ;;  %6438 = vmatprep.subr.mxu1 %v6672_v2 }
 0x391   :  { %v7462_v23 = vpop.permute.xlu0 %3984  ;;  %6439 = vmatpush3.msk.msra.mxu1 %vm59_vm0, %v7302_v51  ;;  %v3487_v26 = vpop.permute.xlu1 %3486  ;;  %6440 = vmatprep.mubr.msk.f32.mxu1 %vm6682_vm11, %v6672_v2 }
 0x392   :  { %6443 = vmatprep.subr.mxu1 %v6672_v2 }
 0x393   :  { %5764 = vrot.lane.b32.xlu1 %v7399_v49, %s6679_s19 }
 0x394   :  { %6304 = vmatmul.mubr.msk.f32.vlgmr.msra.gmra.mrb[4].mxu0 %vm55_vm2, %v7469_v28 }
 0x395   :  { %v3983_v7 = vpop.permute.xlu0 %3982  ;;  %v3489_v8 = vpop.permute.xlu1 %3488  ;;  %3568 = vmatprep.mubr.f32.mxu0 %v6672_v2 }
 0x396   :  { %v3493_v13 = vsel %vm373_vm3, %v3487_v26, %v3489_v8  ;;  %v3990_v56 = vsel %vm886_vm6, %v3983_v7, %v7462_v23 }
 0x397   :  { %6308 = vmatprep.subr.msk.mxu0 %vm59_vm0, %v3493_v13  ;;  %5923 = vrot.lane.b32.xlu1 %v7392_v54, %s6680_s20 }
 0x398   :  { %6441 = vmatmul.mubr.msk.f32.vlgmr.msra.gmra.mrb[4].mxu1 %vm55_vm2, %v7469_v28 }
 0x399   :  { %v7485_v31 = vpop.permute.xlu0 %4150  ;;  %v3485_v5 = vpop.permute.xlu1 %3484  ;;  %6445 = vmatprep.mubr.msk.f32.mxu1 %vm6682_vm11, %v6672_v2 }
 0x39a   :  { %v3492_v32 = vsel %vm373_vm3, %v3485_v5, %v3487_v26 }
 0x39b   :  { %6309 = vmatpush1.msk.msra.mxu0 %vm59_vm0, %v3492_v32  ;;  %5925 = vrot.lane.b32.xlu1 %v7399_v49, %s6680_s20 }
 0x39c   :  { %6310 = vmatmul.mubr.msk.f32.vlgmr.msra.gmra.mrb[4].mxu0 %vm55_vm2, %v7490_v6 }
 0x39d   :  { %v4149_v33 = vpop.permute.xlu0 %4148  ;;  %v3491_v34 = vpop.permute.xlu1 %3490  ;;  %3734 = vmatprep.mubr.f32.mxu0 %v6672_v2 }
 0x39e   :  { %v3494_v35 = vsel %vm373_vm3, %v3489_v8, %v3491_v34  ;;  %v4156_v60 = vsel %vm1057_vm7, %v4149_v33, %v7485_v31 }
 0x39f   :  { %6444 = vmatpush3.msk.msra.mxu1 %vm59_vm0, %v3494_v35 }
 0x3a0   :  { %6446 = vmatmul.mubr.msk.f32.vlgmr.msra.gmra.mrb[4].mxu1 %vm55_vm2, %v7490_v6  ;;  %6448 = vmatprep.subr.mxu1 %v6672_v2 }
 0x3a1   :  { %v7506_v22 = vpop.permute.xlu0 %4316  ;;  %v3655_v36 = vpop.permute.xlu1 %3654  ;;  %6450 = vmatprep.mubr.msk.f32.mxu1 %vm6682_vm11, %v6672_v2 }
 0x3a2   :  { %v3659_v37 = vsel %vm544_vm4, %v3653_v15, %v3655_v36 }
 0x3a3   :  { %6314 = vmatprep.subr.msk.mxu0 %vm59_vm0, %v3659_v37 }
 0x3a4   :  { %6315 = vmatpush1.msk.msra.mxu0 %vm59_vm0, %v3658_v40 }
 0x3a5   :  { %v4315_v41 = vpop.permute.xlu0 %4314  ;;  %6316 = vmatmul.mubr.msk.f32.vlgmr.msra.gmra.mrb[4].mxu0 %vm55_vm2, %v7514_v39  ;;  %v3657_v42 = vpop.permute.xlu1 %3656 }
 0x3a6   :  { %v3660_v30 = vsel %vm544_vm4, %v3655_v36, %v3657_v42  ;;  %3900 = vmatprep.mubr.f32.mxu0 %v6672_v2  ;;  %v4322_v1 = vsel %vm1228_vm8, %v4315_v41, %v7506_v22 }
 0x3a7   :  { %6449 = vmatpush3.msk.msra.mxu1 %vm59_vm0, %v3660_v30 }
 0x3a8   :  { %6451 = vmatmul.mubr.msk.f32.vlgmr.msra.gmra.mrb[4].mxu1 %vm55_vm2, %v7514_v39  ;;  %6453 = vmatprep.subr.mxu1 %v6672_v2 }
 0x3a9   :  { %v7527_v44 = vpop.permute.xlu0 %4482  ;;  %v3821_v45 = vpop.permute.xlu1 %3820  ;;  %6455 = vmatprep.mubr.msk.f32.mxu1 %vm6682_vm11, %v6672_v2 }
 0x3aa   :  { %v3825_v48 = vsel %vm715_vm5, %v7437_v3, %v3821_v45 }
 0x3ab   :  { %6320 = vmatprep.subr.msk.mxu0 %vm59_vm0, %v3825_v48 }
 0x3ac   :  { %6321 = vmatpush1.msk.msra.mxu0 %vm59_vm0, %v3824_v25 }
 0x3ad   :  { %v4481_v20 = vpop.permute.xlu0 %4480  ;;  %6322 = vmatmul.mubr.msk.f32.vlgmr.msra.gmra.mrb[4].mxu0 %vm55_vm2, %v7536_v50  ;;  %v3823_v27 = vpop.permute.xlu1 %3822 }
 0x3ae   :  { %v3826_v51 = vsel %vm715_vm5, %v3821_v45, %v3823_v27  ;;  %4066 = vmatprep.mubr.f32.mxu0 %v6672_v2 }
 0x3af   :  { %6454 = vmatpush3.msk.msra.mxu1 %vm59_vm0, %v3826_v51 }
 0x3b0   :  { %6456 = vmatmul.mubr.msk.f32.vlgmr.msra.gmra.mrb[4].mxu1 %vm55_vm2, %v7536_v50  ;;  %6458 = vmatprep.subr.mxu1 %v6672_v2 }
 0x3b1   :  { %v3987_v29 = vpop.permute.xlu1 %3986  ;;  %v7550_v52 = vpop.permute.xlu0 %4650  ;;  %6460 = vmatprep.mubr.msk.f32.mxu1 %vm6682_vm11, %v6672_v2 }
 0x3b2   :  { %v3991_v53 = vsel %vm886_vm6, %v7462_v23, %v3987_v29  ;;  %v4488_v23 = vsel %vm1399_vm9, %v4481_v20, %v7527_v44 }
 0x3b3   :  { %6326 = vmatprep.subr.msk.mxu0 %vm59_vm0, %v3991_v53 }
 0x3b4   :  { %6327 = vmatpush1.msk.msra.mxu0 %vm59_vm0, %v3990_v56 }
 0x3b5   :  { %6328 = vmatmul.mubr.msk.f32.vlgmr.msra.gmra.mrb[4].mxu0 %vm55_vm2, %v7559_v55  ;;  %v3989_v46 = vpop.permute.xlu1 %3988  ;;  %v4649_v38 = vpop.permute.xlu0 %4648 }
 0x3b6   :  { %v3992_v57 = vsel %vm886_vm6, %v3987_v29, %v3989_v46  ;;  %4232 = vmatprep.mubr.f32.mxu0 %v6672_v2  ;;  %v4656_v5 = vsel %vm51_vm1, %v4649_v38, %v7550_v52 }
 0x3b7   :  { %6459 = vmatpush3.msk.msra.mxu1 %vm59_vm0, %v3992_v57 }
 0x3b8   :  { %6461 = vmatmul.mubr.msk.f32.vlgmr.msra.gmra.mrb[4].mxu1 %vm55_vm2, %v7559_v55  ;;  %6463 = vmatprep.subr.mxu1 %v6672_v2 }
 0x3b9   :  { %v4153_v17 = vpop.permute.xlu1 %4152  ;;  %6465 = vmatprep.mubr.msk.f32.mxu1 %vm6682_vm11, %v6672_v2  ;;  %v7585_v61 = vpop.permute.xlu0 %4955 }
 0x3ba   :  { %v4157_v18 = vsel %vm1057_vm7, %v7485_v31, %v4153_v17 }
 0x3bb   :  { %6332 = vmatprep.subr.msk.mxu0 %vm59_vm0, %v4157_v18 }
 0x3bc   :  { %6333 = vmatpush1.msk.msra.mxu0 %vm59_vm0, %v4156_v60 }
 0x3bd   :  { %6334 = vmatmul.mubr.msk.f32.vlgmr.msra.gmra.mrb[4].mxu0 %vm55_vm2, %v7580_v59  ;;  %v4155_v43 = vpop.permute.xlu1 %4154  ;;  %v4954_v24 = vpop.permute.xlu0 %4953 }
 0x3be   :  { %v4158_v49 = vsel %vm1057_vm7, %v4153_v17, %v4155_v43  ;;  %4398 = vmatprep.mubr.f32.mxu0 %v6672_v2 }
 0x3bf   :  { %6464 = vmatpush3.msk.msra.mxu1 %vm59_vm0, %v4158_v49 }
 0x3c0   :  { %6466 = vmatmul.mubr.msk.f32.vlgmr.msra.gmra.mrb[4].mxu1 %vm55_vm2, %v7580_v59  ;;  %6468 = vmatprep.subr.mxu1 %v6672_v2 }
 0x3c1   :  { %v4319_v15 = vpop.permute.xlu1 %4318  ;;  %6470 = vmatprep.mubr.msk.f32.mxu1 %vm6682_vm11, %v6672_v2  ;;  %v5117_v11 = vpop.permute.xlu0 %5116 }
 0x3c2   :  { %v4323_v63 = vsel %vm1228_vm8, %v7506_v22, %v4319_v15 }
 0x3c3   :  { %6338 = vmatprep.subr.msk.mxu0 %vm59_vm0, %v4323_v63 }
 0x3c4   :  { %6339 = vmatpush1.msk.msra.mxu0 %vm59_vm0, %v4322_v1 }
 0x3c5   :  { %6340 = vmatmul.mubr.msk.f32.vlgmr.msra.gmra.mrb[4].mxu0 %vm55_vm2, %v7603_v0  ;;  %v4321_v3 = vpop.permute.xlu1 %4320  ;;  %v5115_v7 = vpop.permute.xlu0 %5114 }
 0x3c6   :  { %v4324_v62 = vsel %vm1228_vm8, %v4319_v15, %v4321_v3  ;;  %4564 = vmatprep.mubr.f32.mxu0 %v6672_v2  ;;  %v5122_v41 = vsel %vm544_vm4, %v5115_v7, %v5117_v11 }
 0x3c7   :  { %6469 = vmatpush3.msk.msra.mxu1 %vm59_vm0, %v4324_v62 }
 0x3c8   :  { %6471 = vmatmul.mubr.msk.f32.vlgmr.msra.gmra.mrb[4].mxu1 %vm55_vm2, %v7603_v0  ;;  %6473 = vmatprep.subr.mxu1 %v6672_v2 }
 0x3c9   :  { %v4485_v16 = vpop.permute.xlu1 %4484  ;;  %6475 = vmatprep.mubr.msk.f32.mxu1 %vm6682_vm11, %v6672_v2  ;;  %v5278_v32 = vpop.permute.xlu0 %5277 }
 0x3ca   :  { %v4489_v19 = vsel %vm1399_vm9, %v7527_v44, %v4485_v16 }
 0x3cb   :  { %6344 = vmatprep.subr.msk.mxu0 %vm59_vm0, %v4489_v19 }
 0x3cc   :  { %6345 = vmatpush1.msk.msra.mxu0 %vm59_vm0, %v4488_v23 }
 0x3cd   :  { %6346 = vmatmul.mubr.msk.f32.vlgmr.msra.gmra.mrb[4].mxu0 %vm55_vm2, %v7624_v21  ;;  %v4487_v26 = vpop.permute.xlu1 %4486 }
 0x3ce   :  { %v4490_v8 = vsel %vm1399_vm9, %v4485_v16, %v4487_v26  ;;  %4729 = vmatprep.mubr.f32.mxu0 %v6672_v2 }
 0x3cf   :  { %6474 = vmatpush3.msk.msra.mxu1 %vm59_vm0, %v4490_v8 }
 0x3d0   :  { %6476 = vmatmul.mubr.msk.f32.vlgmr.msra.gmra.mrb[4].mxu1 %vm55_vm2, %v7624_v21  ;;  %6478 = vmatprep.subr.mxu1 %v6672_v2 }
 0x3d1   :  { %v4653_v13 = vpop.permute.xlu1 %4652  ;;  %6480 = vmatprep.mubr.msk.f32.mxu1 %vm6682_vm11, %v6672_v2 }
 0x3d2   :  { %v4657_v31 = vsel %vm51_vm1, %v7550_v52, %v4653_v13 }
 0x3d3   :  { %6349 = vmatprep.subr.msk.mxu0 %vm59_vm0, %v4657_v31 }
 0x3d4   :  { %6350 = vmatpush1.msk.msra.mxu0 %vm59_vm0, %v4656_v5 }
 0x3d5   :  { %v4655_v33 = vpop.permute.xlu1 %4654  ;;  %6351 = vmatmul.mubr.msk.f32.vlgmr.msra.gmra.mrb[6].mxu0 %vm55_vm2, %v7442_v4  ;;  %6354 = vmatprep.subr.msk.mxu0 %vm59_vm0, %v7352_v58  ;;  %v5276_v58 = vpop.permute.xlu0 %5275 }
 0x3d6   :  { %v4658_v34 = vsel %vm51_vm1, %v4653_v13, %v4655_v33  ;;  %6355 = vmatpush1.msk.msra.mxu0 %vm59_vm0, %v7359_v47  ;;  %4876 = vmatprep.mubr.f32.mxu0 %v6672_v2  ;;  %v5283_v25 = vsel %vm715_vm5, %v5276_v58, %v5278_v32 }
 0x3d7   :  { %6479 = vmatpush3.msk.msra.mxu1 %vm59_vm0, %v4658_v34 }
 0x3d8   :  { %6481 = vmatmul.mubr.msk.f32.vlgmr.msra.gmra.mrb[6].mxu1 %vm55_vm2, %v7442_v4  ;;  %6483 = vmatprep.subr.mxu1 %v6672_v2  ;;  %v4961_v4 = vsel %vm373_vm3, %v4954_v24, %v7585_v61 }
 0x3d9   :  { %6484 = vmatpush3.msk.msra.mxu1 %vm59_vm0, %v7392_v54  ;;  %v4958_v35 = vpop.permute.xlu1 %4957  ;;  %6485 = vmatprep.mubr.msk.f32.mxu1 %vm6682_vm11, %v6672_v2  ;;  %v5439_v36 = vpop.permute.xlu0 %5438 }
 0x3da   :  { %v4962_v47 = vsel %vm373_vm3, %v7585_v61, %v4958_v35  ;;  %6488 = vmatprep.subr.mxu1 %v6672_v2 }
 0x3db   :  { %6359 = vmatprep.subr.msk.mxu0 %vm59_vm0, %v4962_v47 }
 0x3dd   :  { %v4960_v22 = vpop.permute.xlu1 %4959  ;;  %6356 = vmatmul.mubr.msk.f32.vlgmr.msra.gmra.mrb[6].mxu0 %vm55_vm2, %v7469_v28  ;;  %v5437_v30 = vpop.permute.xlu0 %5436 }
 0x3de   :  { %v4963_v54 = vsel %vm373_vm3, %v4958_v35, %v4960_v22  ;;  %6360 = vmatpush1.msk.msra.mxu0 %vm59_vm0, %v4961_v4  ;;  %5034 = vmatprep.mubr.f32.mxu0 %v6672_v2  ;;  %v5444_v52 = vsel %vm886_vm6, %v5437_v30, %v5439_v36 }
 0x3e0   :  { %6486 = vmatmul.mubr.msk.f32.vlgmr.msra.gmra.mrb[6].mxu1 %vm55_vm2, %v7469_v28 }
 0x3e1   :  { %6489 = vmatpush3.msk.msra.mxu1 %vm59_vm0, %v4963_v54  ;;  %v5119_v37 = vpop.permute.xlu1 %5118  ;;  %6490 = vmatprep.mubr.msk.f32.mxu1 %vm6682_vm11, %v6672_v2  ;;  %v5600_v48 = vpop.permute.xlu0 %5599 }
 0x3e2   :  { %v5123_v40 = vsel %vm544_vm4, %v5117_v11, %v5119_v37  ;;  %6493 = vmatprep.subr.mxu1 %v6672_v2  ;;  %v33_v11 = vld [vmem:[%s7805_s8] sm:$0x7] }
 0x3e3   :  { %6364 = vmatprep.subr.msk.mxu0 %vm59_vm0, %v5123_v40  ;;  %v6084_v16 = vrot.slane %v33_v11, %v1563_v12 }
 0x3e5   :  { %v5121_v42 = vpop.permute.xlu1 %5120  ;;  %6361 = vmatmul.mubr.msk.f32.vlgmr.msra.gmra.mrb[6].mxu0 %vm55_vm2, %v7490_v6  ;;  %v5598_v51 = vpop.permute.xlu0 %5597 }
 0x3e6   :  { %v5124_v28 = vsel %vm544_vm4, %v5119_v37, %v5121_v42  ;;  %6365 = vmatpush1.msk.msra.mxu0 %vm59_vm0, %v5122_v41  ;;  %5195 = vmatprep.mubr.f32.mxu0 %v6672_v2  ;;  %v5605_v38 = vsel %vm1057_vm7, %v5598_v51, %v5600_v48 }
 0x3e8   :  { %6491 = vmatmul.mubr.msk.f32.vlgmr.msra.gmra.mrb[6].mxu1 %vm55_vm2, %v7490_v6 }
 0x3e9   :  { %6494 = vmatpush3.msk.msra.mxu1 %vm59_vm0, %v5124_v28  ;;  %v5280_v44 = vpop.permute.xlu1 %5279  ;;  %6495 = vmatprep.mubr.msk.f32.mxu1 %vm6682_vm11, %v6672_v2  ;;  %v5761_v56 = vpop.permute.xlu0 %5760 }
 0x3ea   :  { %v5284_v45 = vsel %vm715_vm5, %v5278_v32, %v5280_v44  ;;  %6498 = vmatprep.subr.mxu1 %v6672_v2 }
 0x3eb   :  { %6369 = vmatprep.subr.msk.mxu0 %vm59_vm0, %v5284_v45 }
 0x3ed   :  { %v5282_v20 = vpop.permute.xlu1 %5281  ;;  %6366 = vmatmul.mubr.msk.f32.vlgmr.msra.gmra.mrb[6].mxu0 %vm55_vm2, %v7514_v39  ;;  %v5759_v18 = vpop.permute.xlu0 %5758 }
 0x3ee   :  { %v5285_v6 = vsel %vm715_vm5, %v5280_v44, %v5282_v20  ;;  %6370 = vmatpush1.msk.msra.mxu0 %vm59_vm0, %v5283_v25  ;;  %5356 = vmatprep.mubr.f32.mxu0 %v6672_v2  ;;  %v5766_v49 = vsel %vm1228_vm8, %v5759_v18, %v5761_v56 }
 0x3f0   :  { %6496 = vmatmul.mubr.msk.f32.vlgmr.msra.gmra.mrb[6].mxu1 %vm55_vm2, %v7514_v39 }
 0x3f1   :  { %6499 = vmatpush3.msk.msra.mxu1 %vm59_vm0, %v5285_v6  ;;  %v5441_v27 = vpop.permute.xlu1 %5440  ;;  %6500 = vmatprep.mubr.msk.f32.mxu1 %vm6682_vm11, %v6672_v2  ;;  %v5922_v43 = vpop.permute.xlu0 %5921 }
 0x3f2   :  { %v5445_v29 = vsel %vm886_vm6, %v5439_v36, %v5441_v27  ;;  %6503 = vmatprep.subr.mxu1 %v6672_v2 }
 0x3f3   :  { %6374 = vmatprep.subr.msk.mxu0 %vm59_vm0, %v5445_v29 }
 0x3f5   :  { %v5443_v53 = vpop.permute.xlu1 %5442  ;;  %6371 = vmatmul.mubr.msk.f32.vlgmr.msra.gmra.mrb[6].mxu0 %vm55_vm2, %v7536_v50  ;;  %v5920_v63 = vpop.permute.xlu0 %5919 }
 0x3f6   :  { %v5446_v39 = vsel %vm886_vm6, %v5441_v27, %v5443_v53  ;;  %6375 = vmatpush1.msk.msra.mxu0 %vm59_vm0, %v5444_v52  ;;  %5517 = vmatprep.mubr.f32.mxu0 %v6672_v2  ;;  %v5927_v3 = vsel %vm1399_vm9, %v5920_v63, %v5922_v43  ;;  %v6132_v53 = vld [vmem:[%s7806_s5] sm:$0xff] }
 0x3f8   :  { %6501 = vmatmul.mubr.msk.f32.vlgmr.msra.gmra.mrb[6].mxu1 %vm55_vm2, %v7536_v50 }
 0x3f9   :  { %6504 = vmatpush3.msk.msra.mxu1 %vm59_vm0, %v5446_v39  ;;  %v5602_v46 = vpop.permute.xlu1 %5601  ;;  %6505 = vmatprep.mubr.msk.f32.mxu1 %vm6682_vm11, %v6672_v2 }
 0x3fa   :  { %v5606_v57 = vsel %vm1057_vm7, %v5600_v48, %v5602_v46  ;;  %6508 = vmatprep.subr.mxu1 %v6672_v2 }
 0x3fb   :  { %6379 = vmatprep.subr.msk.mxu0 %vm59_vm0, %v5606_v57 }
 0x3fd   :  { %v5604_v17 = vpop.permute.xlu1 %5603  ;;  %6376 = vmatmul.mubr.msk.f32.vlgmr.msra.gmra.mrb[6].mxu0 %vm55_vm2, %v7559_v55 }
 0x3fe   :  { %v5607_v50 = vsel %vm1057_vm7, %v5602_v46, %v5604_v17  ;;  %6380 = vmatpush1.msk.msra.mxu0 %vm59_vm0, %v5605_v38  ;;  %5678 = vmatprep.mubr.f32.mxu0 %v6672_v2  ;;  %v6136_v46 = vld [vmem:[%s7807_s6] sm:$0xff] }
 0x400   :  { %6506 = vmatmul.mubr.msk.f32.vlgmr.msra.gmra.mrb[6].mxu1 %vm55_vm2, %v7559_v55 }
 0x401   :  { %6509 = vmatpush3.msk.msra.mxu1 %vm59_vm0, %v5607_v50  ;;  %v5763_v60 = vpop.permute.xlu1 %5762  ;;  %6510 = vmatprep.mubr.msk.f32.mxu1 %vm6682_vm11, %v6672_v2 }
 0x402   :  { %v5767_v61 = vsel %vm1228_vm8, %v5761_v56, %v5763_v60  ;;  %6513 = vmatprep.subr.mxu1 %v6672_v2 }
 0x403   :  { %6384 = vmatprep.subr.msk.mxu0 %vm59_vm0, %v5767_v61 }
 0x405   :  { %v5765_v15 = vpop.permute.xlu1 %5764  ;;  %6381 = vmatmul.mubr.msk.f32.vlgmr.msra.gmra.mrb[6].mxu0 %vm55_vm2, %v7580_v59 }
 0x406   :  { %v5768_v55 = vsel %vm1228_vm8, %v5763_v60, %v5765_v15  ;;  %6385 = vmatpush1.msk.msra.mxu0 %vm59_vm0, %v5766_v49  ;;  %5839 = vmatprep.mubr.f32.mxu0 %v6672_v2 }
 0x408   :  { %6511 = vmatmul.mubr.msk.f32.vlgmr.msra.gmra.mrb[6].mxu1 %vm55_vm2, %v7580_v59 }
 0x409   :  { %6514 = vmatpush3.msk.msra.mxu1 %vm59_vm0, %v5768_v55  ;;  %v5924_v24 = vpop.permute.xlu1 %5923  ;;  %6515 = vmatprep.mubr.msk.f32.mxu1 %vm6682_vm11, %v6672_v2 }
 0x40a   :  { %v5928_v1 = vsel %vm1399_vm9, %v5922_v43, %v5924_v24  ;;  %6518 = vmatprep.subr.mxu1 %v6672_v2 }
 0x40b   :  { %6389 = vmatprep.subr.msk.mxu0 %vm59_vm0, %v5928_v1 }
 0x40d   :  { %v5926_v62 = vpop.permute.xlu1 %5925  ;;  %6386 = vmatmul.mubr.msk.f32.vlgmr.msra.gmra.mrb[6].mxu0 %vm55_vm2, %v7603_v0 }
 0x40e   :  { %v5929_v59 = vsel %vm1399_vm9, %v5924_v24, %v5926_v62  ;;  %6390 = vmatpush1.msk.msra.mxu0 %vm59_vm0, %v5927_v3  ;;  %6000 = vmatprep.mubr.f32.mxu0 %v6672_v2 }
 0x410   :  { %6516 = vmatmul.mubr.msk.f32.vlgmr.msra.gmra.mrb[6].mxu1 %vm55_vm2, %v7603_v0  ;;  %v6088_v0 = vrot.slane %v33_v11, %v1567_v14 }
 0x411   :  { %6519 = vmatpush3.msk.msra.mxu1 %vm59_vm0, %v5929_v59  ;;  %6520 = vmatprep.mubr.msk.f32.mxu1 %vm6682_vm11, %v6672_v2  ;;  %v6092_v2 = vrot.slane %v33_v11, %v1571_v10 }
 0x415   :  { %6391 = vmatmul.mubr.msk.f32.vlgmr.msra.gmra.mrb[6].mxu0 %vm55_vm2, %v7624_v21 }
 0x418   :  { %6521 = vmatmul.mubr.msk.f32.vlgmr.msra.gmra.mrb[6].mxu1 %vm55_vm2, %v7624_v21 }
 0x4a0   :  { %v4566_v19 = vpop.f32.mrb[4].mxu0 }
 0x4a1   :  { %v6096_v23 = vmul.f32 %v6084_v16, %v4566_v19  ;;  %v4568_v26 = vpop.f32.mrb[5].mxu0 }
 0x4a2   :  { %v6097_v7 = vmul.f32 %v6088_v0, %v4568_v26 }
 0x4a3   :  { %v6104_v8 = vmul.f32 %v6096_v23, %v6096_v23  ;;  %v4637_v13 = vpop.f32.mrb[4].mxu1 }
 0x4a4   :  { %v6099_v21 = vadd.f32 %v6097_v7, %v6096_v23  ;;  %v6105_v31 = vmul.f32 %v6097_v7, %v6097_v7  ;;  %v6098_v5 = vmul.f32 %v6092_v2, %v4637_v13  ;;  %v6477_v32 = vpop.f32.mrb[5].mxu1 }
 0x4a6   :  { %v6107_v33 = vadd.f32 %v6105_v31, %v6104_v8  ;;  %v6100_v34 = vadd.f32 %v6099_v21, %v6098_v5  ;;  %v6106_v35 = vmul.f32 %v6098_v5, %v6098_v5 }
 0x4a8   :  { %6101 = vadd.xlane.f32.xlu0 %v6100_v34  ;;  %v6108_v12 = vadd.f32 %v6107_v33, %v6106_v35 }
 0x4ac   :  { %6109 = vadd.xlane.f32.xlu0 %v6108_v12 }
 0x4e8   :  { %v6002_v14 = vpop.f32.mrb[6].mxu0 }
 0x4e9   :  { %v6112_v58 = vmul.f32 %v6084_v16, %v6002_v14  ;;  %v6004_v47 = vpop.f32.mrb[7].mxu0 }
 0x4ea   :  { %v6113_v9 = vmul.f32 %v6088_v0, %v6004_v47 }
 0x4eb   :  { %v6120_v10 = vmul.f32 %v6112_v58, %v6112_v58  ;;  %v6073_v4 = vpop.f32.mrb[6].mxu1 }
 0x4ec   :  { %v6115_v22 = vadd.f32 %v6113_v9, %v6112_v58  ;;  %v6121_v54 = vmul.f32 %v6113_v9, %v6113_v9  ;;  %v6114_v36 = vmul.f32 %v6092_v2, %v6073_v4  ;;  %v6522_v37 = vpop.f32.mrb[7].mxu1 }
 0x4ee   :  { %v6123_v40 = vadd.f32 %v6121_v54, %v6120_v10  ;;  %v6116_v41 = vadd.f32 %v6115_v22, %v6114_v36  ;;  %v6122_v42 = vmul.f32 %v6114_v36, %v6114_v36 }
 0x4f0   :  { %6117 = vadd.xlane.f32.xlu1 %v6116_v41  ;;  %v6124_v30 = vadd.f32 %v6123_v40, %v6122_v42 }
 0x4f2   :  { %6125 = vadd.xlane.f32.xlu0 %v6124_v30 }
 0x535   :  { %v6102_v28 = vpop.xlane.xlu0 %6101 }
 0x539   :  { %v6110_v44 = vpop.xlane.xlu0 %6109 }
 0x57d   :  { %v6118_v45 = vpop.xlane.xlu1 %6117 }
 0x57e   :  { %v6119_v48 = vadd.f32 %v6118_v45, %v6102_v28 }
 0x57f   :  { %v6126_v25 = vpop.xlane.xlu0 %6125 }
 0x580   :  { %v6128_v20 = vmul.f32 0.001953125, %v6119_v48  ;;  %v6127_v6 = vadd.f32 %v6126_v25, %v6110_v44 }
 0x582   :  { %v6130_v27 = vmul.f32 %v6128_v20, %v6128_v20  ;;  %v6129_v51 = vmul.f32 0.001953125, %v6127_v6 }
 0x584   :  { %v6131_v29 = vsub.f32 %v6129_v51, %v6130_v27 }
 0x586   :  { %v6133_v52 = vadd.f32 1e-05, %v6131_v29 }
 0x588   :  { %6670 = vrsqrt.f32 %v6133_v52 }
 0x592   :  { %v6671_v39 = vpop.eup %6670 }
 0x593   :  { %v6135_v56 = vmul.f32 %v6671_v39, %v6132_v53 }
 0x595   :  { %6141 = vperm.xlu1 %6662, %v6135_v56   ;;  %v6137_v57 = vmul.f32 %v6135_v56, %v6128_v20 }
 0x597   :  { %v6138_v38 = vsub.f32 %v6136_v46, %v6137_v57 }
 0x599   :  { %6149 = vperm.xlu0 %6663, %v6138_v38  }
 0x614   :  { %v6142_v17 = vpop.permute.xlu1 %6141 }
 0x615   :  { %v6144_v18 = vmul.f32 %v6142_v17, %v4566_v19  ;;  %v6145_v50 = vmul.f32 %v6142_v17, %v4568_v26  ;;  %v6146_v60 = vmul.f32 %v6142_v17, %v4637_v13  ;;  %v6161_v61 = vmul.f32 %v6142_v17, %v6002_v14 }
 0x616   :  { %v6162_v43 = vmul.f32 %v6142_v17, %v6004_v47  ;;  %v6163_v49 = vmul.f32 %v6142_v17, %v6073_v4 }
 0x618   :  { %v6150_v15 = vpop.permute.xlu0 %6149 }
 0x619   :  { %v6152_v55 = vadd.f32 %v6150_v15, %v6144_v18  ;;  %v6153_v24 = vadd.f32 %v6150_v15, %v6145_v50  ;;  %v6154_v63 = vadd.f32 %v6150_v15, %v6146_v60  ;;  %v6164_v1 = vadd.f32 %v6161_v61, %v6150_v15 }
 0x61a   :  { %v6165_v3 = vadd.f32 %v6162_v43, %v6150_v15  ;;  %v6166_v62 = vadd.f32 %v6163_v49, %v6150_v15 }
 0x61b   :  { %v6155_v59 = vmax.f32 %v6152_v55, 0.0  ;;  %v6156_v11 = vmax.f32 %v6153_v24, 0.0  ;;  %v6157_v16 = vmax.f32 %v6154_v63, 0.0  ;;  %v6167_v0 = vmax.f32 %v6164_v1, 0.0 }
 0x61c   :  { %v6168_v2 = vmax.f32 %v6165_v3, 0.0  ;;  %v6169_v23 = vmax.f32 %v6166_v62, 0.0 }
 0x61d   :  { %6158 = vst [vmem:[%s7808_s9] sm:$0xff] %v6155_v59  ;;  %6159 = vst [vmem:[%s7808_s9 + $0x8] sm:$0xff] %v6156_v11 }
 0x61e   :  { %6160 = vst [vmem:[%s7808_s9 + $0x10] sm:$0xff] %v6157_v16  ;;  %6394 = vst [vmem:[%s7808_s9 + $0x18] sm:$0xff] %v6167_v0 }
 0x61f   :  { %6395 = vst [vmem:[%s7808_s9 + $0x20] sm:$0xff] %v6168_v2  ;;  %6396 = vst [vmem:[%s7808_s9 + $0x28] sm:$0xff] %v6169_v23 }

</bundles_post_ra>
